<compile_context>
chip_gen: v7x
topology: tpu7x:2x2x1
jax: 0.10.0
libtpu: 0.0.40
codegen_flags: <defaults>
</compile_context>

<pallas_src>
import jax
import jax.numpy as jnp
from jax import lax
from jax.experimental import pallas as pl
from jax.experimental.pallas import tpu as pltpu


# -----------------------------------------------------------------------------
# Fused Ghost-bottleneck kernel (one pallas_call, grid over batch)
# -----------------------------------------------------------------------------
def _make_ghost_kernel(g1c, c_, H, W, pad):
    HW = H * W

    def pw(w_ref, xin):
        """1x1 conv: (Cout, Cin) weight applied to (Cin, HW); BN scale folded."""
        w = w_ref[...]
        cout, cin = w.shape
        if cout >= 8 and cin >= 8:                       # MXU worth filling
            return jnp.dot(w, xin, preferred_element_type=jnp.float32)
        acc = jnp.zeros((cout, HW), jnp.float32)         # tiny channels: VPU FMAs
        for i in range(cin):
            acc = acc + w[:, i:i + 1] * xin[i:i + 1, :]
        return acc

    def dw5(pad_ref, a, wt_ref, bias_ref, wm):
        """5x5 depthwise conv (padding=2) as 25 VPU taps over a zero-padded
        flattened (C, HW) scratch; wm = 5 column-validity masks (1, HW)."""
        C = a.shape[0]
        pad_ref[...] = jnp.zeros(pad_ref.shape, pad_ref.dtype)
        pad_ref[:, pad:pad + HW] = a                     # lane-aligned centre write
        wt = wt_ref[...]                                 # (C, 25), BN folded
        acc = jnp.zeros((C, HW), jnp.float32)
        for ox in range(-2, 3):
            g = jnp.zeros((C, HW), jnp.float32)
            for oy in range(-2, 3):
                t = (oy + 2) * 5 + (ox + 2)
                s = pad + oy * W + ox
                g = g + pad_ref[:, s:s + HW] * wt[:, t:t + 1]
            if ox != 0:                                  # kill row-wrapped taps
                g = g * wm[ox + 2:ox + 3, :]
            acc = acc + g
        return acc + bias_ref[...]

    def kernel(x_ref, w1_ref, b1_ref, wd1_ref, bd1_ref,
               w3a_ref, w3b_ref, b3_ref, wd2_ref, bd2_ref, wm_ref,
               o_ref, pad1_ref, pad2_ref):
        x = x_ref[0]                                     # (c1, HW) f32
        wm = wm_ref[...]                                 # (5, HW)

        # GhostConv(c1, c_).cv1 : 1x1 conv (+folded BN) + SiLU
        a1 = pw(w1_ref, x) + b1_ref[...]
        a1 = a1 * jax.nn.sigmoid(a1)

        # GhostConv(c1, c_).cv2 : 5x5 depthwise (+folded BN) + SiLU
        b1 = dw5(pad1_ref, a1, wd1_ref, bd1_ref, wm)
        b1 = b1 * jax.nn.sigmoid(b1)

        # GhostConv(c_, c2, act=False).cv1 : 1x1 conv over concat([a1, b1]);
        # the channel concat is fused by splitting the weight into two operands.
        a2 = pw(w3a_ref, a1) + pw(w3b_ref, b1) + b3_ref[...]

        # GhostConv(c_, c2, act=False).cv2 : 5x5 depthwise (+folded BN)
        b2 = dw5(pad2_ref, a2, wd2_ref, bd2_ref, wm)

        # concat([a2, b2], channel) + identity shortcut, written as the two
        # halves of the (2, c_, HW) tile -> free contiguous reshape to NCHW.
        o_ref[0, 0, :, :] = (a2 + x[:c_, :]).astype(o_ref.dtype)
        o_ref[0, 1, :, :] = (b2 + x[c_:2 * c_, :]).astype(o_ref.dtype)

    return kernel


# -----------------------------------------------------------------------------
# Host wrapper
# -----------------------------------------------------------------------------
def ghost_forward(x_nchw, params):
    """Ghost(c1, c2, k=3, s=1) forward (identity shortcut => needs c1 == c2)."""
    # TODO(synk): the s == 2 variant (stride-2 DWConv main path + DWConv/Conv
    # shortcut) is not implemented; the default Ghost(c1, c2) uses s == 1.
    # TODO(synk): grid is over batch only; add H-tiling with a 2-row halo for
    # images whose per-batch activations exceed VMEM.
    x = x_nchw.astype(jnp.float32)
    B, C1, H, W = x.shape
    HW = H * W
    p = params
    g1c = p["g1_cv1_w_oihw"].shape[0]        # GhostConv1 hidden channels
    c_ = p["g2_cv1_w_oihw"].shape[0]         # GhostConv2 hidden channels (= c2 // 2)
    assert C1 == 2 * c_ and c_ == 2 * g1c, "s=1 Ghost needs c1 == c2, c2 % 4 == 0"

    # ---- fold the BatchNorm scale into the conv weights (host side) --------
    w1 = p["g1_cv1_scale"][:, None] * p["g1_cv1_w_oihw"].reshape(g1c, C1)
    b1 = p["g1_cv1_bias"].reshape(g1c, 1)
    wd1 = p["g1_cv2_scale"][:, None] * p["g1_cv2_w_oihw"].reshape(g1c, 25)
    bd1 = p["g1_cv2_bias"].reshape(g1c, 1)
    w3 = p["g2_cv1_scale"][:, None] * p["g2_cv1_w_oihw"].reshape(c_, 2 * g1c)
    w3a, w3b = w3[:, :g1c], w3[:, g1c:]
    b3 = p["g2_cv1_bias"].reshape(c_, 1)
    wd2 = p["g2_cv2_scale"][:, None] * p["g2_cv2_w_oihw"].reshape(c_, 25)
    bd2 = p["g2_cv2_bias"].reshape(c_, 1)

    # ---- column-validity masks for the 5 horizontal DW tap offsets ---------
    w_idx = jnp.arange(HW, dtype=jnp.int32) % W
    wmask = jnp.stack([((w_idx + ox >= 0) & (w_idx + ox < W)).astype(jnp.float32)
                       for ox in range(-2, 3)], axis=0)             # (5, HW)

    # halo for the flattened zero-padded DW scratch, rounded up to a lane tile
    # so the centre write stays 128-aligned.
    pad = -(-(2 * W + 2) // 128) * 128
    x2 = x.reshape(B, C1, HW)                # contiguous (free) reshape, no transpose

    # per-step VMEM footprint (double-buffered x/out blocks + weights + scratch)
    est = 4 * (2 * (C1 + 2 * c_) * HW
               + 2 * (g1c * C1 + g1c * 25 + 2 * c_ * g1c + c_ * 25 + 5 * HW
                      + 2 * g1c + 2 * c_)
               + (g1c + c_) * (2 * pad + HW))
    vmem_limit = int(min(max(8 * est, 8 << 20), 32 << 20))   # safe on v5e/v6e/v7x

    def full(shape):
        return pl.BlockSpec(shape, lambda b: (0,) * len(shape))

    out4 = pl.pallas_call(
        _make_ghost_kernel(g1c, c_, H, W, pad),
        out_shape=jax.ShapeDtypeStruct((B, 2, c_, HW), jnp.float32),
        grid_spec=pltpu.PrefetchScalarGridSpec(
            num_scalar_prefetch=0,
            grid=(B,),
            in_specs=[
                pl.BlockSpec((1, C1, HW), lambda b: (b, 0, 0)),    # x (lane-dense)
                full((g1c, C1)), full((g1c, 1)),                   # GhostConv1.cv1
                full((g1c, 25)), full((g1c, 1)),                   # GhostConv1.cv2 (DW)
                full((c_, g1c)), full((c_, g1c)), full((c_, 1)),   # GhostConv2.cv1 (split)
                full((c_, 25)), full((c_, 1)),                     # GhostConv2.cv2 (DW)
                full((5, HW)),                                     # column masks
            ],
            out_specs=pl.BlockSpec((1, 2, c_, HW), lambda b: (b, 0, 0, 0)),
            scratch_shapes=[
                pltpu.VMEM((g1c, 2 * pad + HW), jnp.float32),      # DW1 padded scratch
                pltpu.VMEM((c_, 2 * pad + HW), jnp.float32),       # DW2 padded scratch
            ]),
        compiler_params=pltpu.CompilerParams(
            dimension_semantics=("parallel",),
            vmem_limit_bytes=vmem_limit),
    )(x2, w1, b1, wd1, bd1, w3a, w3b, b3, wd2, bd2, wmask)

    return out4.reshape(B, 2 * c_, H, W)                           # NCHW


ghost_forward_jit = jax.jit(ghost_forward)


# -----------------------------------------------------------------------------
# Parameter construction (deterministic synthetic weights + folded BN)
# -----------------------------------------------------------------------------
def _fold_bn(gamma, beta, mean, var, eps=1e-5):
    scale = gamma / jnp.sqrt(var + eps)
    return scale, beta - mean * scale


def init_ghost_params(key, c1, c2):
    """Deterministic synthetic params mirroring Ghost(c1, c2, k=3, s=1)."""
    assert c1 == c2 and c2 % 4 == 0, "s=1 Ghost needs c1 == c2 and c2 % 4 == 0"
    c_ = c2 // 2
    g1c = c_ // 2
    defs = [("g1_cv1", (g1c, c1, 1, 1)),      # GhostConv1.cv1 : 1x1 + BN + SiLU
            ("g1_cv2", (g1c, 1, 5, 5)),       # GhostConv1.cv2 : 5x5 DW + BN + SiLU
            ("g2_cv1", (c_, c_, 1, 1)),       # GhostConv2.cv1 : 1x1 + BN
            ("g2_cv2", (c_, 1, 5, 5))]        # GhostConv2.cv2 : 5x5 DW + BN
    params = {}
    for name, shape in defs:
        key, kw, kg, kb, km, kv = jax.random.split(key, 6)
        cout = shape[0]
        w = 0.1 * jax.random.normal(kw, shape, jnp.float32)
        gamma = jax.random.uniform(kg, (cout,), jnp.float32, 0.8, 1.2)
        beta = 0.1 * jax.random.normal(kb, (cout,), jnp.float32)
        mean = 0.1 * jax.random.normal(km, (cout,), jnp.float32)
        var = jax.random.uniform(kv, (cout,), jnp.float32, 0.5, 1.5)
        scale, bias = _fold_bn(gamma, beta, mean, var)
        params[name + "_w_oihw"] = w
        params[name + "_scale"] = scale
        params[name + "_bias"] = bias
    return params


# -----------------------------------------------------------------------------
# Pure-JAX reference (correctness check only)
# -----------------------------------------------------------------------------
def _ref_conv_bn_act(x, w, scale, bias, stride, pad, groups, act):
    dn = lax.conv_dimension_numbers(x.shape, w.shape, ("NCHW", "OIHW", "NCHW"))
    y = lax.conv_general_dilated(x, w, (stride, stride), [(pad, pad), (pad, pad)],
                                 dimension_numbers=dn, feature_group_count=groups)
    y = y * scale[None, :, None, None] + bias[None, :, None, None]
    return y * jax.nn.sigmoid(y) if act else y


def ghost_reference(x, p):
    a1 = _ref_conv_bn_act(x, p["g1_cv1_w_oihw"], p["g1_cv1_scale"],
                          p["g1_cv1_bias"], 1, 0, 1, True)
    b1 = _ref_conv_bn_act(a1, p["g1_cv2_w_oihw"], p["g1_cv2_scale"],
                          p["g1_cv2_bias"], 1, 2, a1.shape[1], True)
    y1 = jnp.concatenate([a1, b1], axis=1)
    a2 = _ref_conv_bn_act(y1, p["g2_cv1_w_oihw"], p["g2_cv1_scale"],
                          p["g2_cv1_bias"], 1, 0, 1, False)
    b2 = _ref_conv_bn_act(a2, p["g2_cv2_w_oihw"], p["g2_cv2_scale"],
                          p["g2_cv2_bias"], 1, 2, a2.shape[1], False)
    return jnp.concatenate([a2, b2], axis=1) + x


# -----------------------------------------------------------------------------
if __name__ == "__main__":
    key = jax.random.PRNGKey(0)
    kx, kp = jax.random.split(key)

    B, C, H, W = 2, 8, 16, 16            # Ghost(c1=c2=8): c_=4, ghost hidden=2
    x = jax.random.normal(kx, (B, C, H, W), jnp.float32)   # NCHW, like PyTorch
    params = init_ghost_params(kp, C, C)

    out = jax.block_until_ready(ghost_forward_jit(x, params))
    ref = ghost_reference(x, params)

    assert out.shape == (B, C, H, W), out.shape
    max_err = float(jnp.max(jnp.abs(out - ref)))
    assert jnp.allclose(out, ref, atol=2e-4, rtol=2e-4), max_err

    print("KERNEL_OK")
</pallas_src>

<mosaic_0001>
module attributes {stable_mosaic.version = 11 : i64} {
  func.func @kernel(%arg0: i32, %arg1: memref<1x8x256xf32, #tpu.memory_space<vmem>>, %arg2: memref<2x8xf32, #tpu.memory_space<vmem>>, %arg3: memref<2x1xf32, #tpu.memory_space<vmem>>, %arg4: memref<2x25xf32, #tpu.memory_space<vmem>>, %arg5: memref<2x1xf32, #tpu.memory_space<vmem>>, %arg6: memref<4x2xf32, #tpu.memory_space<vmem>>, %arg7: memref<4x2xf32, #tpu.memory_space<vmem>>, %arg8: memref<4x1xf32, #tpu.memory_space<vmem>>, %arg9: memref<4x25xf32, #tpu.memory_space<vmem>>, %arg10: memref<4x1xf32, #tpu.memory_space<vmem>>, %arg11: memref<5x256xf32, #tpu.memory_space<vmem>>, %arg12: memref<1x2x4x256xf32, #tpu.memory_space<vmem>>, %arg13: memref<2x512xf32, #tpu.memory_space<vmem>>, %arg14: memref<4x512xf32, #tpu.memory_space<vmem>>) attributes {dimension_semantics = [#tpu.dimension_semantics<parallel>], iteration_bounds = array<i64: 2>, scalar_prefetch = 0 : i64, scratch_operands = 2 : i64, tpu.core_type = #tpu.core_type<tc>, window_params = [{transform_indices = @transform_0, window_bounds = array<i64: 1, 8, 256>}, {pipeline_mode = #tpu.pipeline_mode<synchronous>, transform_indices = @transform_1, window_bounds = array<i64: 2, 8>}, {pipeline_mode = #tpu.pipeline_mode<synchronous>, transform_indices = @transform_2, window_bounds = array<i64: 2, 1>}, {pipeline_mode = #tpu.pipeline_mode<synchronous>, transform_indices = @transform_3, window_bounds = array<i64: 2, 25>}, {pipeline_mode = #tpu.pipeline_mode<synchronous>, transform_indices = @transform_4, window_bounds = array<i64: 2, 1>}, {pipeline_mode = #tpu.pipeline_mode<synchronous>, transform_indices = @transform_5, window_bounds = array<i64: 4, 2>}, {pipeline_mode = #tpu.pipeline_mode<synchronous>, transform_indices = @transform_6, window_bounds = array<i64: 4, 2>}, {pipeline_mode = #tpu.pipeline_mode<synchronous>, transform_indices = @transform_7, window_bounds = array<i64: 4, 1>}, {pipeline_mode = #tpu.pipeline_mode<synchronous>, transform_indices = @transform_8, window_bounds = array<i64: 4, 25>}, {pipeline_mode = #tpu.pipeline_mode<synchronous>, transform_indices = @transform_9, window_bounds = array<i64: 4, 1>}, {pipeline_mode = #tpu.pipeline_mode<synchronous>, transform_indices = @transform_10, window_bounds = array<i64: 5, 256>}, {transform_indices = @transform_11, window_bounds = array<i64: 1, 2, 4, 256>}]} {
    %c0 = arith.constant 0 : index
    %c0_0 = arith.constant 0 : index
    %c0_1 = arith.constant 0 : index
    %0 = vector.load %arg1[%c0, %c0_0, %c0_1] : memref<1x8x256xf32, #tpu.memory_space<vmem>>, vector<1x8x256xf32>
    %1 = vector.shape_cast %0 : vector<1x8x256xf32> to vector<8x256xf32>
    %c0_2 = arith.constant 0 : index
    %c0_3 = arith.constant 0 : index
    %2 = vector.load %arg11[%c0_2, %c0_3] : memref<5x256xf32, #tpu.memory_space<vmem>>, vector<5x256xf32>
    %c0_4 = arith.constant 0 : index
    %c0_5 = arith.constant 0 : index
    %3 = vector.load %arg2[%c0_4, %c0_5] : memref<2x8xf32, #tpu.memory_space<vmem>>, vector<2x8xf32>
    %cst = arith.constant 0.000000e+00 : f32
    %4 = vector.broadcast %cst : f32 to vector<2x256xf32>
    %5 = vector.extract_strided_slice %3 {offsets = [0, 0], sizes = [2, 1], strides = [1, 1]} : vector<2x8xf32> to vector<2x1xf32>
    %6 = vector.extract_strided_slice %1 {offsets = [0, 0], sizes = [1, 256], strides = [1, 1]} : vector<8x256xf32> to vector<1x256xf32>
    %7 = vector.broadcast %5 : vector<2x1xf32> to vector<2x256xf32>
    %8 = vector.broadcast %6 : vector<1x256xf32> to vector<2x256xf32>
    %9 = arith.mulf %7, %8 : vector<2x256xf32>
    %10 = arith.addf %4, %9 : vector<2x256xf32>
    %11 = vector.extract_strided_slice %3 {offsets = [0, 1], sizes = [2, 1], strides = [1, 1]} : vector<2x8xf32> to vector<2x1xf32>
    %12 = vector.extract_strided_slice %1 {offsets = [1, 0], sizes = [1, 256], strides = [1, 1]} : vector<8x256xf32> to vector<1x256xf32>
    %13 = vector.broadcast %11 : vector<2x1xf32> to vector<2x256xf32>
    %14 = vector.broadcast %12 : vector<1x256xf32> to vector<2x256xf32>
    %15 = arith.mulf %13, %14 : vector<2x256xf32>
    %16 = arith.addf %10, %15 : vector<2x256xf32>
    %17 = vector.extract_strided_slice %3 {offsets = [0, 2], sizes = [2, 1], strides = [1, 1]} : vector<2x8xf32> to vector<2x1xf32>
    %18 = vector.extract_strided_slice %1 {offsets = [2, 0], sizes = [1, 256], strides = [1, 1]} : vector<8x256xf32> to vector<1x256xf32>
    %19 = vector.broadcast %17 : vector<2x1xf32> to vector<2x256xf32>
    %20 = vector.broadcast %18 : vector<1x256xf32> to vector<2x256xf32>
    %21 = arith.mulf %19, %20 : vector<2x256xf32>
    %22 = arith.addf %16, %21 : vector<2x256xf32>
    %23 = vector.extract_strided_slice %3 {offsets = [0, 3], sizes = [2, 1], strides = [1, 1]} : vector<2x8xf32> to vector<2x1xf32>
    %24 = vector.extract_strided_slice %1 {offsets = [3, 0], sizes = [1, 256], strides = [1, 1]} : vector<8x256xf32> to vector<1x256xf32>
    %25 = vector.broadcast %23 : vector<2x1xf32> to vector<2x256xf32>
    %26 = vector.broadcast %24 : vector<1x256xf32> to vector<2x256xf32>
    %27 = arith.mulf %25, %26 : vector<2x256xf32>
    %28 = arith.addf %22, %27 : vector<2x256xf32>
    %29 = vector.extract_strided_slice %3 {offsets = [0, 4], sizes = [2, 1], strides = [1, 1]} : vector<2x8xf32> to vector<2x1xf32>
    %30 = vector.extract_strided_slice %1 {offsets = [4, 0], sizes = [1, 256], strides = [1, 1]} : vector<8x256xf32> to vector<1x256xf32>
    %31 = vector.broadcast %29 : vector<2x1xf32> to vector<2x256xf32>
    %32 = vector.broadcast %30 : vector<1x256xf32> to vector<2x256xf32>
    %33 = arith.mulf %31, %32 : vector<2x256xf32>
    %34 = arith.addf %28, %33 : vector<2x256xf32>
    %35 = vector.extract_strided_slice %3 {offsets = [0, 5], sizes = [2, 1], strides = [1, 1]} : vector<2x8xf32> to vector<2x1xf32>
    %36 = vector.extract_strided_slice %1 {offsets = [5, 0], sizes = [1, 256], strides = [1, 1]} : vector<8x256xf32> to vector<1x256xf32>
    %37 = vector.broadcast %35 : vector<2x1xf32> to vector<2x256xf32>
    %38 = vector.broadcast %36 : vector<1x256xf32> to vector<2x256xf32>
    %39 = arith.mulf %37, %38 : vector<2x256xf32>
    %40 = arith.addf %34, %39 : vector<2x256xf32>
    %41 = vector.extract_strided_slice %3 {offsets = [0, 6], sizes = [2, 1], strides = [1, 1]} : vector<2x8xf32> to vector<2x1xf32>
    %42 = vector.extract_strided_slice %1 {offsets = [6, 0], sizes = [1, 256], strides = [1, 1]} : vector<8x256xf32> to vector<1x256xf32>
    %43 = vector.broadcast %41 : vector<2x1xf32> to vector<2x256xf32>
    %44 = vector.broadcast %42 : vector<1x256xf32> to vector<2x256xf32>
    %45 = arith.mulf %43, %44 : vector<2x256xf32>
    %46 = arith.addf %40, %45 : vector<2x256xf32>
    %47 = vector.extract_strided_slice %3 {offsets = [0, 7], sizes = [2, 1], strides = [1, 1]} : vector<2x8xf32> to vector<2x1xf32>
    %48 = vector.extract_strided_slice %1 {offsets = [7, 0], sizes = [1, 256], strides = [1, 1]} : vector<8x256xf32> to vector<1x256xf32>
    %49 = vector.broadcast %47 : vector<2x1xf32> to vector<2x256xf32>
    %50 = vector.broadcast %48 : vector<1x256xf32> to vector<2x256xf32>
    %51 = arith.mulf %49, %50 : vector<2x256xf32>
    %52 = arith.addf %46, %51 : vector<2x256xf32>
    %c0_6 = arith.constant 0 : index
    %c0_7 = arith.constant 0 : index
    %53 = vector.load %arg3[%c0_6, %c0_7] : memref<2x1xf32, #tpu.memory_space<vmem>>, vector<2x1xf32>
    %54 = vector.broadcast %53 : vector<2x1xf32> to vector<2x256xf32>
    %55 = arith.addf %52, %54 : vector<2x256xf32>
    %56 = arith.negf %55 : vector<2x256xf32>
    %57 = math.exp %56 : vector<2x256xf32>
    %cst_8 = arith.constant 1.000000e+00 : f32
    %58 = vector.broadcast %cst_8 : f32 to vector<2x256xf32>
    %59 = arith.addf %58, %57 : vector<2x256xf32>
    %60 = arith.divf %58, %59 : vector<2x256xf32>
    %61 = arith.mulf %55, %60 : vector<2x256xf32>
    %cst_9 = arith.constant 0.000000e+00 : f32
    %62 = vector.broadcast %cst_9 : f32 to vector<2x512xf32>
    %c0_10 = arith.constant 0 : index
    %c0_11 = arith.constant 0 : index
    %63 = vector.load %arg13[%c0_10, %c0_11] : memref<2x512xf32, #tpu.memory_space<vmem>>, vector<2x512xf32>
    tpu.vector_store %arg13[%c0_10, %c0_11], %62 {strides = array<i32>} : memref<2x512xf32, #tpu.memory_space<vmem>>, vector<2x512xf32>,
    %c0_12 = arith.constant 0 : index
    %c128 = arith.constant 128 : index
    %64 = vector.load %arg13[%c0_12, %c128] : memref<2x512xf32, #tpu.memory_space<vmem>>, vector<2x256xf32>
    tpu.vector_store %arg13[%c0_12, %c128], %61 {strides = array<i32>} : memref<2x512xf32, #tpu.memory_space<vmem>>, vector<2x256xf32>,
    %c0_13 = arith.constant 0 : index
    %c0_14 = arith.constant 0 : index
    %65 = vector.load %arg4[%c0_13, %c0_14] : memref<2x25xf32, #tpu.memory_space<vmem>>, vector<2x25xf32>
    %cst_15 = arith.constant 0.000000e+00 : f32
    %66 = vector.broadcast %cst_15 : f32 to vector<2x256xf32>
    %cst_16 = arith.constant 0.000000e+00 : f32
    %67 = vector.broadcast %cst_16 : f32 to vector<2x256xf32>
    %c0_17 = arith.constant 0 : index
    %c94 = arith.constant 94 : index
    %68 = vector.load %arg13[%c0_17, %c94] : memref<2x512xf32, #tpu.memory_space<vmem>>, vector<2x256xf32>
    %69 = vector.extract_strided_slice %65 {offsets = [0, 0], sizes = [2, 1], strides = [1, 1]} : vector<2x25xf32> to vector<2x1xf32>
    %70 = vector.broadcast %69 : vector<2x1xf32> to vector<2x256xf32>
    %71 = arith.mulf %68, %70 : vector<2x256xf32>
    %72 = arith.addf %67, %71 : vector<2x256xf32>
    %c0_18 = arith.constant 0 : index
    %c110 = arith.constant 110 : index
    %73 = vector.load %arg13[%c0_18, %c110] : memref<2x512xf32, #tpu.memory_space<vmem>>, vector<2x256xf32>
    %74 = vector.extract_strided_slice %65 {offsets = [0, 5], sizes = [2, 1], strides = [1, 1]} : vector<2x25xf32> to vector<2x1xf32>
    %75 = vector.broadcast %74 : vector<2x1xf32> to vector<2x256xf32>
    %76 = arith.mulf %73, %75 : vector<2x256xf32>
    %77 = arith.addf %72, %76 : vector<2x256xf32>
    %c0_19 = arith.constant 0 : index
    %c126 = arith.constant 126 : index
    %78 = vector.load %arg13[%c0_19, %c126] : memref<2x512xf32, #tpu.memory_space<vmem>>, vector<2x256xf32>
    %79 = vector.extract_strided_slice %65 {offsets = [0, 10], sizes = [2, 1], strides = [1, 1]} : vector<2x25xf32> to vector<2x1xf32>
    %80 = vector.broadcast %79 : vector<2x1xf32> to vector<2x256xf32>
    %81 = arith.mulf %78, %80 : vector<2x256xf32>
    %82 = arith.addf %77, %81 : vector<2x256xf32>
    %c0_20 = arith.constant 0 : index
    %c142 = arith.constant 142 : index
    %83 = vector.load %arg13[%c0_20, %c142] : memref<2x512xf32, #tpu.memory_space<vmem>>, vector<2x256xf32>
    %84 = vector.extract_strided_slice %65 {offsets = [0, 15], sizes = [2, 1], strides = [1, 1]} : vector<2x25xf32> to vector<2x1xf32>
    %85 = vector.broadcast %84 : vector<2x1xf32> to vector<2x256xf32>
    %86 = arith.mulf %83, %85 : vector<2x256xf32>
    %87 = arith.addf %82, %86 : vector<2x256xf32>
    %c0_21 = arith.constant 0 : index
    %c158 = arith.constant 158 : index
    %88 = vector.load %arg13[%c0_21, %c158] : memref<2x512xf32, #tpu.memory_space<vmem>>, vector<2x256xf32>
    %89 = vector.extract_strided_slice %65 {offsets = [0, 20], sizes = [2, 1], strides = [1, 1]} : vector<2x25xf32> to vector<2x1xf32>
    %90 = vector.broadcast %89 : vector<2x1xf32> to vector<2x256xf32>
    %91 = arith.mulf %88, %90 : vector<2x256xf32>
    %92 = arith.addf %87, %91 : vector<2x256xf32>
    %93 = vector.extract_strided_slice %2 {offsets = [0, 0], sizes = [1, 256], strides = [1, 1]} : vector<5x256xf32> to vector<1x256xf32>
    %94 = vector.broadcast %93 : vector<1x256xf32> to vector<2x256xf32>
    %95 = arith.mulf %92, %94 : vector<2x256xf32>
    %96 = arith.addf %66, %95 : vector<2x256xf32>
    %cst_22 = arith.constant 0.000000e+00 : f32
    %97 = vector.broadcast %cst_22 : f32 to vector<2x256xf32>
    %c0_23 = arith.constant 0 : index
    %c95 = arith.constant 95 : index
    %98 = vector.load %arg13[%c0_23, %c95] : memref<2x512xf32, #tpu.memory_space<vmem>>, vector<2x256xf32>
    %99 = vector.extract_strided_slice %65 {offsets = [0, 1], sizes = [2, 1], strides = [1, 1]} : vector<2x25xf32> to vector<2x1xf32>
    %100 = vector.broadcast %99 : vector<2x1xf32> to vector<2x256xf32>
    %101 = arith.mulf %98, %100 : vector<2x256xf32>
    %102 = arith.addf %97, %101 : vector<2x256xf32>
    %c0_24 = arith.constant 0 : index
    %c111 = arith.constant 111 : index
    %103 = vector.load %arg13[%c0_24, %c111] : memref<2x512xf32, #tpu.memory_space<vmem>>, vector<2x256xf32>
    %104 = vector.extract_strided_slice %65 {offsets = [0, 6], sizes = [2, 1], strides = [1, 1]} : vector<2x25xf32> to vector<2x1xf32>
    %105 = vector.broadcast %104 : vector<2x1xf32> to vector<2x256xf32>
    %106 = arith.mulf %103, %105 : vector<2x256xf32>
    %107 = arith.addf %102, %106 : vector<2x256xf32>
    %c0_25 = arith.constant 0 : index
    %c127 = arith.constant 127 : index
    %108 = vector.load %arg13[%c0_25, %c127] : memref<2x512xf32, #tpu.memory_space<vmem>>, vector<2x256xf32>
    %109 = vector.extract_strided_slice %65 {offsets = [0, 11], sizes = [2, 1], strides = [1, 1]} : vector<2x25xf32> to vector<2x1xf32>
    %110 = vector.broadcast %109 : vector<2x1xf32> to vector<2x256xf32>
    %111 = arith.mulf %108, %110 : vector<2x256xf32>
    %112 = arith.addf %107, %111 : vector<2x256xf32>
    %c0_26 = arith.constant 0 : index
    %c143 = arith.constant 143 : index
    %113 = vector.load %arg13[%c0_26, %c143] : memref<2x512xf32, #tpu.memory_space<vmem>>, vector<2x256xf32>
    %114 = vector.extract_strided_slice %65 {offsets = [0, 16], sizes = [2, 1], strides = [1, 1]} : vector<2x25xf32> to vector<2x1xf32>
    %115 = vector.broadcast %114 : vector<2x1xf32> to vector<2x256xf32>
    %116 = arith.mulf %113, %115 : vector<2x256xf32>
    %117 = arith.addf %112, %116 : vector<2x256xf32>
    %c0_27 = arith.constant 0 : index
    %c159 = arith.constant 159 : index
    %118 = vector.load %arg13[%c0_27, %c159] : memref<2x512xf32, #tpu.memory_space<vmem>>, vector<2x256xf32>
    %119 = vector.extract_strided_slice %65 {offsets = [0, 21], sizes = [2, 1], strides = [1, 1]} : vector<2x25xf32> to vector<2x1xf32>
    %120 = vector.broadcast %119 : vector<2x1xf32> to vector<2x256xf32>
    %121 = arith.mulf %118, %120 : vector<2x256xf32>
    %122 = arith.addf %117, %121 : vector<2x256xf32>
    %123 = vector.extract_strided_slice %2 {offsets = [1, 0], sizes = [1, 256], strides = [1, 1]} : vector<5x256xf32> to vector<1x256xf32>
    %124 = vector.broadcast %123 : vector<1x256xf32> to vector<2x256xf32>
    %125 = arith.mulf %122, %124 : vector<2x256xf32>
    %126 = arith.addf %96, %125 : vector<2x256xf32>
    %cst_28 = arith.constant 0.000000e+00 : f32
    %127 = vector.broadcast %cst_28 : f32 to vector<2x256xf32>
    %c0_29 = arith.constant 0 : index
    %c96 = arith.constant 96 : index
    %128 = vector.load %arg13[%c0_29, %c96] : memref<2x512xf32, #tpu.memory_space<vmem>>, vector<2x256xf32>
    %129 = vector.extract_strided_slice %65 {offsets = [0, 2], sizes = [2, 1], strides = [1, 1]} : vector<2x25xf32> to vector<2x1xf32>
    %130 = vector.broadcast %129 : vector<2x1xf32> to vector<2x256xf32>
    %131 = arith.mulf %128, %130 : vector<2x256xf32>
    %132 = arith.addf %127, %131 : vector<2x256xf32>
    %c0_30 = arith.constant 0 : index
    %c112 = arith.constant 112 : index
    %133 = vector.load %arg13[%c0_30, %c112] : memref<2x512xf32, #tpu.memory_space<vmem>>, vector<2x256xf32>
    %134 = vector.extract_strided_slice %65 {offsets = [0, 7], sizes = [2, 1], strides = [1, 1]} : vector<2x25xf32> to vector<2x1xf32>
    %135 = vector.broadcast %134 : vector<2x1xf32> to vector<2x256xf32>
    %136 = arith.mulf %133, %135 : vector<2x256xf32>
    %137 = arith.addf %132, %136 : vector<2x256xf32>
    %c0_31 = arith.constant 0 : index
    %c128_32 = arith.constant 128 : index
    %138 = vector.load %arg13[%c0_31, %c128_32] : memref<2x512xf32, #tpu.memory_space<vmem>>, vector<2x256xf32>
    %139 = vector.extract_strided_slice %65 {offsets = [0, 12], sizes = [2, 1], strides = [1, 1]} : vector<2x25xf32> to vector<2x1xf32>
    %140 = vector.broadcast %139 : vector<2x1xf32> to vector<2x256xf32>
    %141 = arith.mulf %138, %140 : vector<2x256xf32>
    %142 = arith.addf %137, %141 : vector<2x256xf32>
    %c0_33 = arith.constant 0 : index
    %c144 = arith.constant 144 : index
    %143 = vector.load %arg13[%c0_33, %c144] : memref<2x512xf32, #tpu.memory_space<vmem>>, vector<2x256xf32>
    %144 = vector.extract_strided_slice %65 {offsets = [0, 17], sizes = [2, 1], strides = [1, 1]} : vector<2x25xf32> to vector<2x1xf32>
    %145 = vector.broadcast %144 : vector<2x1xf32> to vector<2x256xf32>
    %146 = arith.mulf %143, %145 : vector<2x256xf32>
    %147 = arith.addf %142, %146 : vector<2x256xf32>
    %c0_34 = arith.constant 0 : index
    %c160 = arith.constant 160 : index
    %148 = vector.load %arg13[%c0_34, %c160] : memref<2x512xf32, #tpu.memory_space<vmem>>, vector<2x256xf32>
    %149 = vector.extract_strided_slice %65 {offsets = [0, 22], sizes = [2, 1], strides = [1, 1]} : vector<2x25xf32> to vector<2x1xf32>
    %150 = vector.broadcast %149 : vector<2x1xf32> to vector<2x256xf32>
    %151 = arith.mulf %148, %150 : vector<2x256xf32>
    %152 = arith.addf %147, %151 : vector<2x256xf32>
    %153 = arith.addf %126, %152 : vector<2x256xf32>
    %cst_35 = arith.constant 0.000000e+00 : f32
    %154 = vector.broadcast %cst_35 : f32 to vector<2x256xf32>
    %c0_36 = arith.constant 0 : index
    %c97 = arith.constant 97 : index
    %155 = vector.load %arg13[%c0_36, %c97] : memref<2x512xf32, #tpu.memory_space<vmem>>, vector<2x256xf32>
    %156 = vector.extract_strided_slice %65 {offsets = [0, 3], sizes = [2, 1], strides = [1, 1]} : vector<2x25xf32> to vector<2x1xf32>
    %157 = vector.broadcast %156 : vector<2x1xf32> to vector<2x256xf32>
    %158 = arith.mulf %155, %157 : vector<2x256xf32>
    %159 = arith.addf %154, %158 : vector<2x256xf32>
    %c0_37 = arith.constant 0 : index
    %c113 = arith.constant 113 : index
    %160 = vector.load %arg13[%c0_37, %c113] : memref<2x512xf32, #tpu.memory_space<vmem>>, vector<2x256xf32>
    %161 = vector.extract_strided_slice %65 {offsets = [0, 8], sizes = [2, 1], strides = [1, 1]} : vector<2x25xf32> to vector<2x1xf32>
    %162 = vector.broadcast %161 : vector<2x1xf32> to vector<2x256xf32>
    %163 = arith.mulf %160, %162 : vector<2x256xf32>
    %164 = arith.addf %159, %163 : vector<2x256xf32>
    %c0_38 = arith.constant 0 : index
    %c129 = arith.constant 129 : index
    %165 = vector.load %arg13[%c0_38, %c129] : memref<2x512xf32, #tpu.memory_space<vmem>>, vector<2x256xf32>
    %166 = vector.extract_strided_slice %65 {offsets = [0, 13], sizes = [2, 1], strides = [1, 1]} : vector<2x25xf32> to vector<2x1xf32>
    %167 = vector.broadcast %166 : vector<2x1xf32> to vector<2x256xf32>
    %168 = arith.mulf %165, %167 : vector<2x256xf32>
    %169 = arith.addf %164, %168 : vector<2x256xf32>
    %c0_39 = arith.constant 0 : index
    %c145 = arith.constant 145 : index
    %170 = vector.load %arg13[%c0_39, %c145] : memref<2x512xf32, #tpu.memory_space<vmem>>, vector<2x256xf32>
    %171 = vector.extract_strided_slice %65 {offsets = [0, 18], sizes = [2, 1], strides = [1, 1]} : vector<2x25xf32> to vector<2x1xf32>
    %172 = vector.broadcast %171 : vector<2x1xf32> to vector<2x256xf32>
    %173 = arith.mulf %170, %172 : vector<2x256xf32>
    %174 = arith.addf %169, %173 : vector<2x256xf32>
    %c0_40 = arith.constant 0 : index
    %c161 = arith.constant 161 : index
    %175 = vector.load %arg13[%c0_40, %c161] : memref<2x512xf32, #tpu.memory_space<vmem>>, vector<2x256xf32>
    %176 = vector.extract_strided_slice %65 {offsets = [0, 23], sizes = [2, 1], strides = [1, 1]} : vector<2x25xf32> to vector<2x1xf32>
    %177 = vector.broadcast %176 : vector<2x1xf32> to vector<2x256xf32>
    %178 = arith.mulf %175, %177 : vector<2x256xf32>
    %179 = arith.addf %174, %178 : vector<2x256xf32>
    %180 = vector.extract_strided_slice %2 {offsets = [3, 0], sizes = [1, 256], strides = [1, 1]} : vector<5x256xf32> to vector<1x256xf32>
    %181 = vector.broadcast %180 : vector<1x256xf32> to vector<2x256xf32>
    %182 = arith.mulf %179, %181 : vector<2x256xf32>
    %183 = arith.addf %153, %182 : vector<2x256xf32>
    %cst_41 = arith.constant 0.000000e+00 : f32
    %184 = vector.broadcast %cst_41 : f32 to vector<2x256xf32>
    %c0_42 = arith.constant 0 : index
    %c98 = arith.constant 98 : index
    %185 = vector.load %arg13[%c0_42, %c98] : memref<2x512xf32, #tpu.memory_space<vmem>>, vector<2x256xf32>
    %186 = vector.extract_strided_slice %65 {offsets = [0, 4], sizes = [2, 1], strides = [1, 1]} : vector<2x25xf32> to vector<2x1xf32>
    %187 = vector.broadcast %186 : vector<2x1xf32> to vector<2x256xf32>
    %188 = arith.mulf %185, %187 : vector<2x256xf32>
    %189 = arith.addf %184, %188 : vector<2x256xf32>
    %c0_43 = arith.constant 0 : index
    %c114 = arith.constant 114 : index
    %190 = vector.load %arg13[%c0_43, %c114] : memref<2x512xf32, #tpu.memory_space<vmem>>, vector<2x256xf32>
    %191 = vector.extract_strided_slice %65 {offsets = [0, 9], sizes = [2, 1], strides = [1, 1]} : vector<2x25xf32> to vector<2x1xf32>
    %192 = vector.broadcast %191 : vector<2x1xf32> to vector<2x256xf32>
    %193 = arith.mulf %190, %192 : vector<2x256xf32>
    %194 = arith.addf %189, %193 : vector<2x256xf32>
    %c0_44 = arith.constant 0 : index
    %c130 = arith.constant 130 : index
    %195 = vector.load %arg13[%c0_44, %c130] : memref<2x512xf32, #tpu.memory_space<vmem>>, vector<2x256xf32>
    %196 = vector.extract_strided_slice %65 {offsets = [0, 14], sizes = [2, 1], strides = [1, 1]} : vector<2x25xf32> to vector<2x1xf32>
    %197 = vector.broadcast %196 : vector<2x1xf32> to vector<2x256xf32>
    %198 = arith.mulf %195, %197 : vector<2x256xf32>
    %199 = arith.addf %194, %198 : vector<2x256xf32>
    %c0_45 = arith.constant 0 : index
    %c146 = arith.constant 146 : index
    %200 = vector.load %arg13[%c0_45, %c146] : memref<2x512xf32, #tpu.memory_space<vmem>>, vector<2x256xf32>
    %201 = vector.extract_strided_slice %65 {offsets = [0, 19], sizes = [2, 1], strides = [1, 1]} : vector<2x25xf32> to vector<2x1xf32>
    %202 = vector.broadcast %201 : vector<2x1xf32> to vector<2x256xf32>
    %203 = arith.mulf %200, %202 : vector<2x256xf32>
    %204 = arith.addf %199, %203 : vector<2x256xf32>
    %c0_46 = arith.constant 0 : index
    %c162 = arith.constant 162 : index
    %205 = vector.load %arg13[%c0_46, %c162] : memref<2x512xf32, #tpu.memory_space<vmem>>, vector<2x256xf32>
    %206 = vector.extract_strided_slice %65 {offsets = [0, 24], sizes = [2, 1], strides = [1, 1]} : vector<2x25xf32> to vector<2x1xf32>
    %207 = vector.broadcast %206 : vector<2x1xf32> to vector<2x256xf32>
    %208 = arith.mulf %205, %207 : vector<2x256xf32>
    %209 = arith.addf %204, %208 : vector<2x256xf32>
    %210 = vector.extract_strided_slice %2 {offsets = [4, 0], sizes = [1, 256], strides = [1, 1]} : vector<5x256xf32> to vector<1x256xf32>
    %211 = vector.broadcast %210 : vector<1x256xf32> to vector<2x256xf32>
    %212 = arith.mulf %209, %211 : vector<2x256xf32>
    %213 = arith.addf %183, %212 : vector<2x256xf32>
    %c0_47 = arith.constant 0 : index
    %c0_48 = arith.constant 0 : index
    %214 = vector.load %arg5[%c0_47, %c0_48] : memref<2x1xf32, #tpu.memory_space<vmem>>, vector<2x1xf32>
    %215 = vector.broadcast %214 : vector<2x1xf32> to vector<2x256xf32>
    %216 = arith.addf %213, %215 : vector<2x256xf32>
    %217 = arith.negf %216 : vector<2x256xf32>
    %218 = math.exp %217 : vector<2x256xf32>
    %cst_49 = arith.constant 1.000000e+00 : f32
    %219 = vector.broadcast %cst_49 : f32 to vector<2x256xf32>
    %220 = arith.addf %219, %218 : vector<2x256xf32>
    %221 = arith.divf %219, %220 : vector<2x256xf32>
    %222 = arith.mulf %216, %221 : vector<2x256xf32>
    %c0_50 = arith.constant 0 : index
    %c0_51 = arith.constant 0 : index
    %223 = vector.load %arg6[%c0_50, %c0_51] : memref<4x2xf32, #tpu.memory_space<vmem>>, vector<4x2xf32>
    %cst_52 = arith.constant 0.000000e+00 : f32
    %224 = vector.broadcast %cst_52 : f32 to vector<4x256xf32>
    %225 = vector.extract_strided_slice %223 {offsets = [0, 0], sizes = [4, 1], strides = [1, 1]} : vector<4x2xf32> to vector<4x1xf32>
    %226 = vector.extract_strided_slice %61 {offsets = [0, 0], sizes = [1, 256], strides = [1, 1]} : vector<2x256xf32> to vector<1x256xf32>
    %227 = vector.broadcast %225 : vector<4x1xf32> to vector<4x256xf32>
    %228 = vector.broadcast %226 : vector<1x256xf32> to vector<4x256xf32>
    %229 = arith.mulf %227, %228 : vector<4x256xf32>
    %230 = arith.addf %224, %229 : vector<4x256xf32>
    %231 = vector.extract_strided_slice %223 {offsets = [0, 1], sizes = [4, 1], strides = [1, 1]} : vector<4x2xf32> to vector<4x1xf32>
    %232 = vector.extract_strided_slice %61 {offsets = [1, 0], sizes = [1, 256], strides = [1, 1]} : vector<2x256xf32> to vector<1x256xf32>
    %233 = vector.broadcast %231 : vector<4x1xf32> to vector<4x256xf32>
    %234 = vector.broadcast %232 : vector<1x256xf32> to vector<4x256xf32>
    %235 = arith.mulf %233, %234 : vector<4x256xf32>
    %236 = arith.addf %230, %235 : vector<4x256xf32>
    %c0_53 = arith.constant 0 : index
    %c0_54 = arith.constant 0 : index
    %237 = vector.load %arg7[%c0_53, %c0_54] : memref<4x2xf32, #tpu.memory_space<vmem>>, vector<4x2xf32>
    %cst_55 = arith.constant 0.000000e+00 : f32
    %238 = vector.broadcast %cst_55 : f32 to vector<4x256xf32>
    %239 = vector.extract_strided_slice %237 {offsets = [0, 0], sizes = [4, 1], strides = [1, 1]} : vector<4x2xf32> to vector<4x1xf32>
    %240 = vector.extract_strided_slice %222 {offsets = [0, 0], sizes = [1, 256], strides = [1, 1]} : vector<2x256xf32> to vector<1x256xf32>
    %241 = vector.broadcast %239 : vector<4x1xf32> to vector<4x256xf32>
    %242 = vector.broadcast %240 : vector<1x256xf32> to vector<4x256xf32>
    %243 = arith.mulf %241, %242 : vector<4x256xf32>
    %244 = arith.addf %238, %243 : vector<4x256xf32>
    %245 = vector.extract_strided_slice %237 {offsets = [0, 1], sizes = [4, 1], strides = [1, 1]} : vector<4x2xf32> to vector<4x1xf32>
    %246 = vector.extract_strided_slice %222 {offsets = [1, 0], sizes = [1, 256], strides = [1, 1]} : vector<2x256xf32> to vector<1x256xf32>
    %247 = vector.broadcast %245 : vector<4x1xf32> to vector<4x256xf32>
    %248 = vector.broadcast %246 : vector<1x256xf32> to vector<4x256xf32>
    %249 = arith.mulf %247, %248 : vector<4x256xf32>
    %250 = arith.addf %244, %249 : vector<4x256xf32>
    %251 = arith.addf %236, %250 : vector<4x256xf32>
    %c0_56 = arith.constant 0 : index
    %c0_57 = arith.constant 0 : index
    %252 = vector.load %arg8[%c0_56, %c0_57] : memref<4x1xf32, #tpu.memory_space<vmem>>, vector<4x1xf32>
    %253 = vector.broadcast %252 : vector<4x1xf32> to vector<4x256xf32>
    %254 = arith.addf %251, %253 : vector<4x256xf32>
    %cst_58 = arith.constant 0.000000e+00 : f32
    %255 = vector.broadcast %cst_58 : f32 to vector<4x512xf32>
    %c0_59 = arith.constant 0 : index
    %c0_60 = arith.constant 0 : index
    %256 = vector.load %arg14[%c0_59, %c0_60] : memref<4x512xf32, #tpu.memory_space<vmem>>, vector<4x512xf32>
    tpu.vector_store %arg14[%c0_59, %c0_60], %255 {strides = array<i32>} : memref<4x512xf32, #tpu.memory_space<vmem>>, vector<4x512xf32>,
    %c0_61 = arith.constant 0 : index
    %c128_62 = arith.constant 128 : index
    %257 = vector.load %arg14[%c0_61, %c128_62] : memref<4x512xf32, #tpu.memory_space<vmem>>, vector<4x256xf32>
    tpu.vector_store %arg14[%c0_61, %c128_62], %254 {strides = array<i32>} : memref<4x512xf32, #tpu.memory_space<vmem>>, vector<4x256xf32>,
    %c0_63 = arith.constant 0 : index
    %c0_64 = arith.constant 0 : index
    %258 = vector.load %arg9[%c0_63, %c0_64] : memref<4x25xf32, #tpu.memory_space<vmem>>, vector<4x25xf32>
    %cst_65 = arith.constant 0.000000e+00 : f32
    %259 = vector.broadcast %cst_65 : f32 to vector<4x256xf32>
    %cst_66 = arith.constant 0.000000e+00 : f32
    %260 = vector.broadcast %cst_66 : f32 to vector<4x256xf32>
    %c0_67 = arith.constant 0 : index
    %c94_68 = arith.constant 94 : index
    %261 = vector.load %arg14[%c0_67, %c94_68] : memref<4x512xf32, #tpu.memory_space<vmem>>, vector<4x256xf32>
    %262 = vector.extract_strided_slice %258 {offsets = [0, 0], sizes = [4, 1], strides = [1, 1]} : vector<4x25xf32> to vector<4x1xf32>
    %263 = vector.broadcast %262 : vector<4x1xf32> to vector<4x256xf32>
    %264 = arith.mulf %261, %263 : vector<4x256xf32>
    %265 = arith.addf %260, %264 : vector<4x256xf32>
    %c0_69 = arith.constant 0 : index
    %c110_70 = arith.constant 110 : index
    %266 = vector.load %arg14[%c0_69, %c110_70] : memref<4x512xf32, #tpu.memory_space<vmem>>, vector<4x256xf32>
    %267 = vector.extract_strided_slice %258 {offsets = [0, 5], sizes = [4, 1], strides = [1, 1]} : vector<4x25xf32> to vector<4x1xf32>
    %268 = vector.broadcast %267 : vector<4x1xf32> to vector<4x256xf32>
    %269 = arith.mulf %266, %268 : vector<4x256xf32>
    %270 = arith.addf %265, %269 : vector<4x256xf32>
    %c0_71 = arith.constant 0 : index
    %c126_72 = arith.constant 126 : index
    %271 = vector.load %arg14[%c0_71, %c126_72] : memref<4x512xf32, #tpu.memory_space<vmem>>, vector<4x256xf32>
    %272 = vector.extract_strided_slice %258 {offsets = [0, 10], sizes = [4, 1], strides = [1, 1]} : vector<4x25xf32> to vector<4x1xf32>
    %273 = vector.broadcast %272 : vector<4x1xf32> to vector<4x256xf32>
    %274 = arith.mulf %271, %273 : vector<4x256xf32>
    %275 = arith.addf %270, %274 : vector<4x256xf32>
    %c0_73 = arith.constant 0 : index
    %c142_74 = arith.constant 142 : index
    %276 = vector.load %arg14[%c0_73, %c142_74] : memref<4x512xf32, #tpu.memory_space<vmem>>, vector<4x256xf32>
    %277 = vector.extract_strided_slice %258 {offsets = [0, 15], sizes = [4, 1], strides = [1, 1]} : vector<4x25xf32> to vector<4x1xf32>
    %278 = vector.broadcast %277 : vector<4x1xf32> to vector<4x256xf32>
    %279 = arith.mulf %276, %278 : vector<4x256xf32>
    %280 = arith.addf %275, %279 : vector<4x256xf32>
    %c0_75 = arith.constant 0 : index
    %c158_76 = arith.constant 158 : index
    %281 = vector.load %arg14[%c0_75, %c158_76] : memref<4x512xf32, #tpu.memory_space<vmem>>, vector<4x256xf32>
    %282 = vector.extract_strided_slice %258 {offsets = [0, 20], sizes = [4, 1], strides = [1, 1]} : vector<4x25xf32> to vector<4x1xf32>
    %283 = vector.broadcast %282 : vector<4x1xf32> to vector<4x256xf32>
    %284 = arith.mulf %281, %283 : vector<4x256xf32>
    %285 = arith.addf %280, %284 : vector<4x256xf32>
    %286 = vector.extract_strided_slice %2 {offsets = [0, 0], sizes = [1, 256], strides = [1, 1]} : vector<5x256xf32> to vector<1x256xf32>
    %287 = vector.broadcast %286 : vector<1x256xf32> to vector<4x256xf32>
    %288 = arith.mulf %285, %287 : vector<4x256xf32>
    %289 = arith.addf %259, %288 : vector<4x256xf32>
    %cst_77 = arith.constant 0.000000e+00 : f32
    %290 = vector.broadcast %cst_77 : f32 to vector<4x256xf32>
    %c0_78 = arith.constant 0 : index
    %c95_79 = arith.constant 95 : index
    %291 = vector.load %arg14[%c0_78, %c95_79] : memref<4x512xf32, #tpu.memory_space<vmem>>, vector<4x256xf32>
    %292 = vector.extract_strided_slice %258 {offsets = [0, 1], sizes = [4, 1], strides = [1, 1]} : vector<4x25xf32> to vector<4x1xf32>
    %293 = vector.broadcast %292 : vector<4x1xf32> to vector<4x256xf32>
    %294 = arith.mulf %291, %293 : vector<4x256xf32>
    %295 = arith.addf %290, %294 : vector<4x256xf32>
    %c0_80 = arith.constant 0 : index
    %c111_81 = arith.constant 111 : index
    %296 = vector.load %arg14[%c0_80, %c111_81] : memref<4x512xf32, #tpu.memory_space<vmem>>, vector<4x256xf32>
    %297 = vector.extract_strided_slice %258 {offsets = [0, 6], sizes = [4, 1], strides = [1, 1]} : vector<4x25xf32> to vector<4x1xf32>
    %298 = vector.broadcast %297 : vector<4x1xf32> to vector<4x256xf32>
    %299 = arith.mulf %296, %298 : vector<4x256xf32>
    %300 = arith.addf %295, %299 : vector<4x256xf32>
    %c0_82 = arith.constant 0 : index
    %c127_83 = arith.constant 127 : index
    %301 = vector.load %arg14[%c0_82, %c127_83] : memref<4x512xf32, #tpu.memory_space<vmem>>, vector<4x256xf32>
    %302 = vector.extract_strided_slice %258 {offsets = [0, 11], sizes = [4, 1], strides = [1, 1]} : vector<4x25xf32> to vector<4x1xf32>
    %303 = vector.broadcast %302 : vector<4x1xf32> to vector<4x256xf32>
    %304 = arith.mulf %301, %303 : vector<4x256xf32>
    %305 = arith.addf %300, %304 : vector<4x256xf32>
    %c0_84 = arith.constant 0 : index
    %c143_85 = arith.constant 143 : index
    %306 = vector.load %arg14[%c0_84, %c143_85] : memref<4x512xf32, #tpu.memory_space<vmem>>, vector<4x256xf32>
    %307 = vector.extract_strided_slice %258 {offsets = [0, 16], sizes = [4, 1], strides = [1, 1]} : vector<4x25xf32> to vector<4x1xf32>
    %308 = vector.broadcast %307 : vector<4x1xf32> to vector<4x256xf32>
    %309 = arith.mulf %306, %308 : vector<4x256xf32>
    %310 = arith.addf %305, %309 : vector<4x256xf32>
    %c0_86 = arith.constant 0 : index
    %c159_87 = arith.constant 159 : index
    %311 = vector.load %arg14[%c0_86, %c159_87] : memref<4x512xf32, #tpu.memory_space<vmem>>, vector<4x256xf32>
    %312 = vector.extract_strided_slice %258 {offsets = [0, 21], sizes = [4, 1], strides = [1, 1]} : vector<4x25xf32> to vector<4x1xf32>
    %313 = vector.broadcast %312 : vector<4x1xf32> to vector<4x256xf32>
    %314 = arith.mulf %311, %313 : vector<4x256xf32>
    %315 = arith.addf %310, %314 : vector<4x256xf32>
    %316 = vector.extract_strided_slice %2 {offsets = [1, 0], sizes = [1, 256], strides = [1, 1]} : vector<5x256xf32> to vector<1x256xf32>
    %317 = vector.broadcast %316 : vector<1x256xf32> to vector<4x256xf32>
    %318 = arith.mulf %315, %317 : vector<4x256xf32>
    %319 = arith.addf %289, %318 : vector<4x256xf32>
    %cst_88 = arith.constant 0.000000e+00 : f32
    %320 = vector.broadcast %cst_88 : f32 to vector<4x256xf32>
    %c0_89 = arith.constant 0 : index
    %c96_90 = arith.constant 96 : index
    %321 = vector.load %arg14[%c0_89, %c96_90] : memref<4x512xf32, #tpu.memory_space<vmem>>, vector<4x256xf32>
    %322 = vector.extract_strided_slice %258 {offsets = [0, 2], sizes = [4, 1], strides = [1, 1]} : vector<4x25xf32> to vector<4x1xf32>
    %323 = vector.broadcast %322 : vector<4x1xf32> to vector<4x256xf32>
    %324 = arith.mulf %321, %323 : vector<4x256xf32>
    %325 = arith.addf %320, %324 : vector<4x256xf32>
    %c0_91 = arith.constant 0 : index
    %c112_92 = arith.constant 112 : index
    %326 = vector.load %arg14[%c0_91, %c112_92] : memref<4x512xf32, #tpu.memory_space<vmem>>, vector<4x256xf32>
    %327 = vector.extract_strided_slice %258 {offsets = [0, 7], sizes = [4, 1], strides = [1, 1]} : vector<4x25xf32> to vector<4x1xf32>
    %328 = vector.broadcast %327 : vector<4x1xf32> to vector<4x256xf32>
    %329 = arith.mulf %326, %328 : vector<4x256xf32>
    %330 = arith.addf %325, %329 : vector<4x256xf32>
    %c0_93 = arith.constant 0 : index
    %c128_94 = arith.constant 128 : index
    %331 = vector.load %arg14[%c0_93, %c128_94] : memref<4x512xf32, #tpu.memory_space<vmem>>, vector<4x256xf32>
    %332 = vector.extract_strided_slice %258 {offsets = [0, 12], sizes = [4, 1], strides = [1, 1]} : vector<4x25xf32> to vector<4x1xf32>
    %333 = vector.broadcast %332 : vector<4x1xf32> to vector<4x256xf32>
    %334 = arith.mulf %331, %333 : vector<4x256xf32>
    %335 = arith.addf %330, %334 : vector<4x256xf32>
    %c0_95 = arith.constant 0 : index
    %c144_96 = arith.constant 144 : index
    %336 = vector.load %arg14[%c0_95, %c144_96] : memref<4x512xf32, #tpu.memory_space<vmem>>, vector<4x256xf32>
    %337 = vector.extract_strided_slice %258 {offsets = [0, 17], sizes = [4, 1], strides = [1, 1]} : vector<4x25xf32> to vector<4x1xf32>
    %338 = vector.broadcast %337 : vector<4x1xf32> to vector<4x256xf32>
    %339 = arith.mulf %336, %338 : vector<4x256xf32>
    %340 = arith.addf %335, %339 : vector<4x256xf32>
    %c0_97 = arith.constant 0 : index
    %c160_98 = arith.constant 160 : index
    %341 = vector.load %arg14[%c0_97, %c160_98] : memref<4x512xf32, #tpu.memory_space<vmem>>, vector<4x256xf32>
    %342 = vector.extract_strided_slice %258 {offsets = [0, 22], sizes = [4, 1], strides = [1, 1]} : vector<4x25xf32> to vector<4x1xf32>
    %343 = vector.broadcast %342 : vector<4x1xf32> to vector<4x256xf32>
    %344 = arith.mulf %341, %343 : vector<4x256xf32>
    %345 = arith.addf %340, %344 : vector<4x256xf32>
    %346 = arith.addf %319, %345 : vector<4x256xf32>
    %cst_99 = arith.constant 0.000000e+00 : f32
    %347 = vector.broadcast %cst_99 : f32 to vector<4x256xf32>
    %c0_100 = arith.constant 0 : index
    %c97_101 = arith.constant 97 : index
    %348 = vector.load %arg14[%c0_100, %c97_101] : memref<4x512xf32, #tpu.memory_space<vmem>>, vector<4x256xf32>
    %349 = vector.extract_strided_slice %258 {offsets = [0, 3], sizes = [4, 1], strides = [1, 1]} : vector<4x25xf32> to vector<4x1xf32>
    %350 = vector.broadcast %349 : vector<4x1xf32> to vector<4x256xf32>
    %351 = arith.mulf %348, %350 : vector<4x256xf32>
    %352 = arith.addf %347, %351 : vector<4x256xf32>
    %c0_102 = arith.constant 0 : index
    %c113_103 = arith.constant 113 : index
    %353 = vector.load %arg14[%c0_102, %c113_103] : memref<4x512xf32, #tpu.memory_space<vmem>>, vector<4x256xf32>
    %354 = vector.extract_strided_slice %258 {offsets = [0, 8], sizes = [4, 1], strides = [1, 1]} : vector<4x25xf32> to vector<4x1xf32>
    %355 = vector.broadcast %354 : vector<4x1xf32> to vector<4x256xf32>
    %356 = arith.mulf %353, %355 : vector<4x256xf32>
    %357 = arith.addf %352, %356 : vector<4x256xf32>
    %c0_104 = arith.constant 0 : index
    %c129_105 = arith.constant 129 : index
    %358 = vector.load %arg14[%c0_104, %c129_105] : memref<4x512xf32, #tpu.memory_space<vmem>>, vector<4x256xf32>
    %359 = vector.extract_strided_slice %258 {offsets = [0, 13], sizes = [4, 1], strides = [1, 1]} : vector<4x25xf32> to vector<4x1xf32>
    %360 = vector.broadcast %359 : vector<4x1xf32> to vector<4x256xf32>
    %361 = arith.mulf %358, %360 : vector<4x256xf32>
    %362 = arith.addf %357, %361 : vector<4x256xf32>
    %c0_106 = arith.constant 0 : index
    %c145_107 = arith.constant 145 : index
    %363 = vector.load %arg14[%c0_106, %c145_107] : memref<4x512xf32, #tpu.memory_space<vmem>>, vector<4x256xf32>
    %364 = vector.extract_strided_slice %258 {offsets = [0, 18], sizes = [4, 1], strides = [1, 1]} : vector<4x25xf32> to vector<4x1xf32>
    %365 = vector.broadcast %364 : vector<4x1xf32> to vector<4x256xf32>
    %366 = arith.mulf %363, %365 : vector<4x256xf32>
    %367 = arith.addf %362, %366 : vector<4x256xf32>
    %c0_108 = arith.constant 0 : index
    %c161_109 = arith.constant 161 : index
    %368 = vector.load %arg14[%c0_108, %c161_109] : memref<4x512xf32, #tpu.memory_space<vmem>>, vector<4x256xf32>
    %369 = vector.extract_strided_slice %258 {offsets = [0, 23], sizes = [4, 1], strides = [1, 1]} : vector<4x25xf32> to vector<4x1xf32>
    %370 = vector.broadcast %369 : vector<4x1xf32> to vector<4x256xf32>
    %371 = arith.mulf %368, %370 : vector<4x256xf32>
    %372 = arith.addf %367, %371 : vector<4x256xf32>
    %373 = vector.extract_strided_slice %2 {offsets = [3, 0], sizes = [1, 256], strides = [1, 1]} : vector<5x256xf32> to vector<1x256xf32>
    %374 = vector.broadcast %373 : vector<1x256xf32> to vector<4x256xf32>
    %375 = arith.mulf %372, %374 : vector<4x256xf32>
    %376 = arith.addf %346, %375 : vector<4x256xf32>
    %cst_110 = arith.constant 0.000000e+00 : f32
    %377 = vector.broadcast %cst_110 : f32 to vector<4x256xf32>
    %c0_111 = arith.constant 0 : index
    %c98_112 = arith.constant 98 : index
    %378 = vector.load %arg14[%c0_111, %c98_112] : memref<4x512xf32, #tpu.memory_space<vmem>>, vector<4x256xf32>
    %379 = vector.extract_strided_slice %258 {offsets = [0, 4], sizes = [4, 1], strides = [1, 1]} : vector<4x25xf32> to vector<4x1xf32>
    %380 = vector.broadcast %379 : vector<4x1xf32> to vector<4x256xf32>
    %381 = arith.mulf %378, %380 : vector<4x256xf32>
    %382 = arith.addf %377, %381 : vector<4x256xf32>
    %c0_113 = arith.constant 0 : index
    %c114_114 = arith.constant 114 : index
    %383 = vector.load %arg14[%c0_113, %c114_114] : memref<4x512xf32, #tpu.memory_space<vmem>>, vector<4x256xf32>
    %384 = vector.extract_strided_slice %258 {offsets = [0, 9], sizes = [4, 1], strides = [1, 1]} : vector<4x25xf32> to vector<4x1xf32>
    %385 = vector.broadcast %384 : vector<4x1xf32> to vector<4x256xf32>
    %386 = arith.mulf %383, %385 : vector<4x256xf32>
    %387 = arith.addf %382, %386 : vector<4x256xf32>
    %c0_115 = arith.constant 0 : index
    %c130_116 = arith.constant 130 : index
    %388 = vector.load %arg14[%c0_115, %c130_116] : memref<4x512xf32, #tpu.memory_space<vmem>>, vector<4x256xf32>
    %389 = vector.extract_strided_slice %258 {offsets = [0, 14], sizes = [4, 1], strides = [1, 1]} : vector<4x25xf32> to vector<4x1xf32>
    %390 = vector.broadcast %389 : vector<4x1xf32> to vector<4x256xf32>
    %391 = arith.mulf %388, %390 : vector<4x256xf32>
    %392 = arith.addf %387, %391 : vector<4x256xf32>
    %c0_117 = arith.constant 0 : index
    %c146_118 = arith.constant 146 : index
    %393 = vector.load %arg14[%c0_117, %c146_118] : memref<4x512xf32, #tpu.memory_space<vmem>>, vector<4x256xf32>
    %394 = vector.extract_strided_slice %258 {offsets = [0, 19], sizes = [4, 1], strides = [1, 1]} : vector<4x25xf32> to vector<4x1xf32>
    %395 = vector.broadcast %394 : vector<4x1xf32> to vector<4x256xf32>
    %396 = arith.mulf %393, %395 : vector<4x256xf32>
    %397 = arith.addf %392, %396 : vector<4x256xf32>
    %c0_119 = arith.constant 0 : index
    %c162_120 = arith.constant 162 : index
    %398 = vector.load %arg14[%c0_119, %c162_120] : memref<4x512xf32, #tpu.memory_space<vmem>>, vector<4x256xf32>
    %399 = vector.extract_strided_slice %258 {offsets = [0, 24], sizes = [4, 1], strides = [1, 1]} : vector<4x25xf32> to vector<4x1xf32>
    %400 = vector.broadcast %399 : vector<4x1xf32> to vector<4x256xf32>
    %401 = arith.mulf %398, %400 : vector<4x256xf32>
    %402 = arith.addf %397, %401 : vector<4x256xf32>
    %403 = vector.extract_strided_slice %2 {offsets = [4, 0], sizes = [1, 256], strides = [1, 1]} : vector<5x256xf32> to vector<1x256xf32>
    %404 = vector.broadcast %403 : vector<1x256xf32> to vector<4x256xf32>
    %405 = arith.mulf %402, %404 : vector<4x256xf32>
    %406 = arith.addf %376, %405 : vector<4x256xf32>
    %c0_121 = arith.constant 0 : index
    %c0_122 = arith.constant 0 : index
    %407 = vector.load %arg10[%c0_121, %c0_122] : memref<4x1xf32, #tpu.memory_space<vmem>>, vector<4x1xf32>
    %408 = vector.broadcast %407 : vector<4x1xf32> to vector<4x256xf32>
    %409 = arith.addf %406, %408 : vector<4x256xf32>
    %410 = vector.extract_strided_slice %1 {offsets = [0, 0], sizes = [4, 256], strides = [1, 1]} : vector<8x256xf32> to vector<4x256xf32>
    %411 = arith.addf %254, %410 : vector<4x256xf32>
    %c0_123 = arith.constant 0 : index
    %c0_124 = arith.constant 0 : index
    %c0_125 = arith.constant 0 : index
    %c0_126 = arith.constant 0 : index
    %412 = vector.load %arg12[%c0_123, %c0_124, %c0_125, %c0_126] : memref<1x2x4x256xf32, #tpu.memory_space<vmem>>, vector<1x1x4x256xf32>
    %413 = vector.shape_cast %412 : vector<1x1x4x256xf32> to vector<4x256xf32>
    %414 = vector.shape_cast %411 : vector<4x256xf32> to vector<1x1x4x256xf32>
    tpu.vector_store %arg12[%c0_123, %c0_124, %c0_125, %c0_126], %414 {strides = array<i32>} : memref<1x2x4x256xf32, #tpu.memory_space<vmem>>, vector<1x1x4x256xf32>,
    %415 = vector.extract_strided_slice %1 {offsets = [4, 0], sizes = [4, 256], strides = [1, 1]} : vector<8x256xf32> to vector<4x256xf32>
    %416 = arith.addf %409, %415 : vector<4x256xf32>
    %c0_127 = arith.constant 0 : index
    %c1 = arith.constant 1 : index
    %c0_128 = arith.constant 0 : index
    %c0_129 = arith.constant 0 : index
    %417 = vector.load %arg12[%c0_127, %c1, %c0_128, %c0_129] : memref<1x2x4x256xf32, #tpu.memory_space<vmem>>, vector<1x1x4x256xf32>
    %418 = vector.shape_cast %417 : vector<1x1x4x256xf32> to vector<4x256xf32>
    %419 = vector.shape_cast %416 : vector<4x256xf32> to vector<1x1x4x256xf32>
    tpu.vector_store %arg12[%c0_127, %c1, %c0_128, %c0_129], %419 {strides = array<i32>} : memref<1x2x4x256xf32, #tpu.memory_space<vmem>>, vector<1x1x4x256xf32>,
    return
  }
  func.func @transform_0(%arg0: i32) -> (i32, i32, i32) {
    %c0_i32 = arith.constant 0 : i32
    %c0_i32_0 = arith.constant 0 : i32
    %c0_i32_1 = arith.constant 0 : i32
    return %arg0, %c0_i32, %c0_i32_0 : i32, i32, i32
  }
  func.func @transform_1(%arg0: i32) -> (i32, i32) {
    %c0_i32 = arith.constant 0 : i32
    %c0_i32_0 = arith.constant 0 : i32
    %c0_i32_1 = arith.constant 0 : i32
    return %c0_i32, %c0_i32_0 : i32, i32
  }
  func.func @transform_2(%arg0: i32) -> (i32, i32) {
    %c0_i32 = arith.constant 0 : i32
    %c0_i32_0 = arith.constant 0 : i32
    %c0_i32_1 = arith.constant 0 : i32
    return %c0_i32, %c0_i32_0 : i32, i32
  }
  func.func @transform_3(%arg0: i32) -> (i32, i32) {
    %c0_i32 = arith.constant 0 : i32
    %c0_i32_0 = arith.constant 0 : i32
    %c0_i32_1 = arith.constant 0 : i32
    return %c0_i32, %c0_i32_0 : i32, i32
  }
  func.func @transform_4(%arg0: i32) -> (i32, i32) {
    %c0_i32 = arith.constant 0 : i32
    %c0_i32_0 = arith.constant 0 : i32
    %c0_i32_1 = arith.constant 0 : i32
    return %c0_i32, %c0_i32_0 : i32, i32
  }
  func.func @transform_5(%arg0: i32) -> (i32, i32) {
    %c0_i32 = arith.constant 0 : i32
    %c0_i32_0 = arith.constant 0 : i32
    %c0_i32_1 = arith.constant 0 : i32
    return %c0_i32, %c0_i32_0 : i32, i32
  }
  func.func @transform_6(%arg0: i32) -> (i32, i32) {
    %c0_i32 = arith.constant 0 : i32
    %c0_i32_0 = arith.constant 0 : i32
    %c0_i32_1 = arith.constant 0 : i32
    return %c0_i32, %c0_i32_0 : i32, i32
  }
  func.func @transform_7(%arg0: i32) -> (i32, i32) {
    %c0_i32 = arith.constant 0 : i32
    %c0_i32_0 = arith.constant 0 : i32
    %c0_i32_1 = arith.constant 0 : i32
    return %c0_i32, %c0_i32_0 : i32, i32
  }
  func.func @transform_8(%arg0: i32) -> (i32, i32) {
    %c0_i32 = arith.constant 0 : i32
    %c0_i32_0 = arith.constant 0 : i32
    %c0_i32_1 = arith.constant 0 : i32
    return %c0_i32, %c0_i32_0 : i32, i32
  }
  func.func @transform_9(%arg0: i32) -> (i32, i32) {
    %c0_i32 = arith.constant 0 : i32
    %c0_i32_0 = arith.constant 0 : i32
    %c0_i32_1 = arith.constant 0 : i32
    return %c0_i32, %c0_i32_0 : i32, i32
  }
  func.func @transform_10(%arg0: i32) -> (i32, i32) {
    %c0_i32 = arith.constant 0 : i32
    %c0_i32_0 = arith.constant 0 : i32
    %c0_i32_1 = arith.constant 0 : i32
    return %c0_i32, %c0_i32_0 : i32, i32
  }
  func.func @transform_11(%arg0: i32) -> (i32, i32, i32, i32) {
    %c0_i32 = arith.constant 0 : i32
    %c0_i32_0 = arith.constant 0 : i32
    %c0_i32_1 = arith.constant 0 : i32
    %c0_i32_2 = arith.constant 0 : i32
    return %arg0, %c0_i32, %c0_i32_0, %c0_i32_1 : i32, i32, i32, i32
  }
}

</mosaic_0001>

<bundles_post_ra>
// kernel: ghost_forward.1
= control target key start
LH: loop header
LB: loop body
LE: loop exit
PB: predicated region body
PF: predicated region fallthrough
CT: control target
= control target key end

     0   :  { %s2376_s17 = smov 0   ;;  %s3123_s0 = inlined_call_operand.vmem [shape: f32[2,8,256], index: 0, kind: input, shape index: {}]   ;;  %s3124_s1 = inlined_call_operand.vmem [shape: f32[2,8], index: 1, kind: input, shape index: {}]   ;;  %s3125_s2 = inlined_call_operand.vmem [shape: f32[2,1], index: 2, kind: input, shape index: {}]   ;;  %s3126_s3 = inlined_call_operand.vmem [shape: f32[2,25], index: 3, kind: input, shape index: {}]   ;;  %s3127_s4 = inlined_call_operand.vmem [shape: f32[2,1], index: 4, kind: input, shape index: {}]   ;;  %s3128_s5 = inlined_call_operand.vmem [shape: f32[4,2], index: 5, kind: input, shape index: {}]   ;;  %s3129_s6 = inlined_call_operand.vmem [shape: f32[4,2], index: 6, kind: input, shape index: {}]   ;;  %s3130_s7 = inlined_call_operand.vmem [shape: f32[4,1], index: 7, kind: input, shape index: {}]   ;;  %s3131_s8 = inlined_call_operand.vmem [shape: f32[4,25], index: 8, kind: input, shape index: {}]   ;;  %s3132_s9 = inlined_call_operand.vmem [shape: f32[4,1], index: 9, kind: input, shape index: {}]   ;;  %s3133_s10 = inlined_call_operand.vmem [shape: f32[5,256], index: 10, kind: input, shape index: {}]   ;;  %s3134_s11 = inlined_call_operand.vmem [shape: f32[2,2,4,256], index: 11, kind: output, shape index: {}]  }
   0x1 LB: > { %s2120_s18 = sadd.s32 4294967295, %s2272_s17   ;;  %p2124_p0 = scmp.ge.s32.totalorder %s2272_s17, 1  ;;  %s2272_s17 = sphi %s2376_s17, %s21_s17  }
   0x2   : > { %p337_p1 = scmp.lt.s32.totalorder %s2272_s17, 3 }
   0x4   : > { %p338_p2 = pnand %p2124_p0, %p337_p1 }
   0x5   : > { %v391_v0 = vld [vmem:[%s3124_s1] sm:$0x3] (!%p338_p2)  ;;  %v3138_v1 = vmov (!%p338_p2), 2   ;;  %v2275_v2 = vmov (!%p338_p2), 0   ;;  %v3137_v3 = vmov (!%p338_p2), 3   ;;  %v2277_v4 = vmov (!%p338_p2), 1  }
   0x6   : > { %341 = sbr.rel (%p338_p2) target bundleno = 1064 (0x428), region = 64  ;;  %2190 = vset.pattern.permute.xlu1 (!%p338_p2), %v3138_v1  ;;  %2188 = vset.pattern.permute.xlu0 (!%p338_p2), %v2275_v2  ;;  %v3136_v5 = vmov (!%p338_p2), 4   ;;  %v3141_v6 = vmov (!%p338_p2), 5   ;;  %v521_v7 = vld [vmem:[%s3125_s2] sm:$0x3] (!%p338_p2)  ;;  %v2280_v8 = vmov (!%p338_p2), 6   ;;  %v397_v21 = vlaneseq (!%p338_p2) }
   0x7   : > { %426 = vperm.xlu1 (!%p338_p2), %2190, %v391_v0   ;;  %394 = vperm.xlu0 (!%p338_p2), %2188, %v391_v0   ;;  %v2281_v9 = vmov (!%p338_p2), 7   ;;  %v2402_v10 = vld [vmem:[%s3126_s3] sm:$0x3] (!%p338_p2)  ;;  %v2282_v11 = vmov (!%p338_p2), 16   ;;  %v2283_v12 = vmov (!%p338_p2), 0.0   ;;  %v2284_v13 = vmov (!%p338_p2), 21  }
   0x8   : > { %543 = vst [vmem:[#allocation2] sm:$0xff] (!%p338_p2), %v2283_v12  ;;  %1305 = vst [vmem:[#allocation3] sm:$0xff] (!%p338_p2), %v2283_v12  ;;  %v2285_v14 = vmov (!%p338_p2), 11   ;;  %v2286_v15 = vmov (!%p338_p2), 9   ;;  %v3144_v16 = vmov (!%p338_p2), 14   ;;  %v2288_v17 = vmov (!%p338_p2), 8  }
   0x9   : > { %1306 = vst [vmem:[#allocation3 + $0x8] sm:$0xff] (!%p338_p2), %v2283_v12  ;;  %v3142_v18 = vmov (!%p338_p2), 19   ;;  %v2290_v19 = vmov (!%p338_p2), 12   ;;  %v2291_v20 = vmov (!%p338_p2), 13   ;;  %v2292_v22 = vmov (!%p338_p2), 17   ;;  %s2296_s29 = smov (!%p338_p2), 97  }
   0xa   : > { %v2434_v23 = vshrl.u32 (!%p338_p2), %v397_v21, 7  ;;  %v2293_v24 = vmov (!%p338_p2), 1983009808   ;;  %v2294_v28 = vmov (!%p338_p2), 18   ;;  %v389_v29 = vld [vmem:[%s3133_s10] sm:$0x1f] (!%p338_p2) }
   0xb   : > { %2191 = vset.pattern.permute.xlu1 (!%p338_p2), %v3137_v3  ;;  %2189 = vset.pattern.permute.xlu0 (!%p338_p2), %v2277_v4  ;;  %v665_v25 = vunpack.c.l.s4 (!%p338_p2), %v2293_v24  ;;  %v390_v30 = vld [vmem:[%s3133_s10 + $0x8] sm:$0x1f] (!%p338_p2)  ;;  %v2295_v35 = vmov (!%p338_p2), 22   ;;  %v3143_v37 = vmov (!%p338_p2), 23   ;;  %v2298_v38 = vmov (!%p338_p2), 24   ;;  %s2302_s30 = smov (!%p338_p2), 95  }
   0xc   : > { %442 = vperm.xlu1 (!%p338_p2), %2191, %v391_v0   ;;  %410 = vperm.xlu0 (!%p338_p2), %2189, %v391_v0   ;;  %v2437_v26 = vsub.s32 (!%p338_p2), 3, %v2434_v23  ;;  %v3140_v39 = vmov (!%p338_p2), 10   ;;  %v3139_v40 = vmov (!%p338_p2), 15   ;;  %v2471_v41 = vsub.s32 (!%p338_p2), 1, %v2434_v23  ;;  %p377_p3 = scmp.lt.s32.totalorder (!%p338_p2), %s2120_s18, 1  ;;  %s2304_s16 = smov (!%p338_p2), 80  }
   0xd   : > { %v666_v27 = vunpack.c.0.s8 %v665_v25  ;;  %v2474_v42 = vsub.s32 4, %v2434_v23  ;;  %v3135_v49 = vmov 20   ;;  %v2493_v51 = vsub.s32 0, %v2434_v23  ;;  %s2305_s19 = smov 112   ;;  %s2306_s20 = smov 96  }
   0xe   : > { %v995_v31 = vrot.slane %v389_v29, %v2437_v26  ;;  %v999_v32 = vrot.slane %v390_v30, %v2437_v26  ;;  %v773_v43 = vrot.slane %v389_v29, %v2471_v41  ;;  %v777_v44 = vrot.slane %v390_v30, %v2471_v41  ;;  %s3165_s18 = smov (!%p377_p3, %s2120_s18), 1  ;;  %s2307_s21 = smov 64  }
   0xf   : > { %v2451_v33 = vsub.s32 %v666_v27, %v2434_v23  ;;  %v1119_v45 = vrot.slane %v389_v29, %v2474_v42  ;;  %v1123_v46 = vrot.slane %v390_v30, %v2474_v42  ;;  %v656_v52 = vrot.slane %v389_v29, %v2493_v51  ;;  %s2136_s12 = sshll.u32 %s3165_s18, 4  ;;  %s2308_s22 = smov 98  }
  0x10   : > { %2192 = vset.pattern.permute.xlu1 %v3136_v5  ;;  %2193 = vset.pattern.permute.xlu0 %v3141_v6  ;;  %v2453_v34 = vcombine.low %v995_v31, %v999_v32  ;;  %v2484_v48 = vcombine.low %v773_v43, %v777_v44  ;;  %v660_v53 = vrot.slane %v390_v30, %v2493_v51  ;;  %s2511_s15 = scalar_lea.vmem %s3123_s0, %s2136_s12  ;;  %v2514_v55 = vsub.s32 2, %v2434_v23  ;;  %s2309_s23 = smov 94  }
  0x11   : > { %458 = vperm.xlu1 %2192, %v391_v0   ;;  %474 = vperm.xlu0 %2193, %v391_v0   ;;  %v2481_v47 = vcombine.low %v1119_v45, %v1123_v46  ;;  %v2517_v58 = vld [vmem:[%s2511_s15] sm:$0xff]  ;;  %v2520_v59 = vld [vmem:[%s2511_s15 + $0x8] sm:$0xff]  ;;  %v2539_v27 = vsub.s32 5, %v2434_v23  ;;  %vm588_vm0 = vcmask 916480   ;;  %vm608_vm1 = vcmask 785408   ;;  %s3145_s24 = smov 127  }
  0x12   : > { %v1009_v36 = vrot.slane %v2453_v34, %v2451_v33  ;;  %v787_v50 = vrot.slane %v2484_v48, %v2451_v33  ;;  %v2499_v54 = vcombine.low %v656_v52, %v660_v53  ;;  %v400_v60 = vrot.slane %v2517_v58, %v2493_v51  ;;  %s3149_s27 = smov 126   ;;  %s3147_s28 = smov 125  }
  0x13   : > { %v404_v61 = vrot.slane %v2520_v59, %v2493_v51  ;;  %v416_v62 = vrot.slane %v2517_v58, %v2471_v41  ;;  %v420_v63 = vrot.slane %v2520_v59, %v2471_v41  ;;  %v448_v21 = vrot.slane %v2517_v58, %v2437_v26  ;;  %s2313_s25 = smov 124  }
  0x14   : > { %v452_v24 = vrot.slane %v2520_v59, %v2437_v26  ;;  %v468_v43 = vrot.slane %v2520_v59, %v2474_v42  ;;  %v480_v52 = vrot.slane %v2517_v58, %v2539_v27  ;;  %v484_v53 = vrot.slane %v2520_v59, %v2539_v27 }
  0x15   : > { %2194 = vset.pattern.permute.xlu1 %v2280_v8  ;;  %2196 = vset.pattern.permute.xlu0 %v2275_v2  ;;  %vm629_vm2 = vcmask 654336   ;;  %vm649_vm3 = vcmask 523264   ;;  %vm791_vm4 = vcmask 777216   ;;  %vm1013_vm5 = vcmask 793600  }
  0x16   : > { %490 = vperm.xlu1 %2194, %v391_v0   ;;  %524 = vperm.xlu0 %2196, %v521_v7   ;;  %v436_v7 = vrot.slane %v2520_v59, %v2514_v55  ;;  %vm1137_vm6 = vcmask 801792   ;;  %vm674_vm7 = vcmask 769024   ;;  %vm799_vm8 = vcmask 1039360  }
  0x17   : > { %vm899_vm9 = vcmask 1031168   ;;  %vm1021_vm10 = vcmask 1022976   ;;  %vm1145_vm11 = vcmask 1014784   ;;  %vm1290_vm12 = vcmask 277504  }
  0x18   : > { %vm1352_vm13 = vcmask 1043456  }
  0x1a   : > { %2195 = vset.pattern.permute.xlu1 %v2281_v9  ;;  %2199 = vset.pattern.permute.xlu0 %v2282_v11 }
  0x1b   : > { %506 = vperm.xlu1 %2195, %v391_v0   ;;  %733 = vperm.xlu0 %2199, %v2402_v10   ;;  %v432_v0 = vrot.slane %v2517_v58, %v2514_v55 }
  0x1f   : > { %2197 = vset.pattern.permute.xlu1 %v2280_v8  ;;  %2202 = vset.pattern.permute.xlu0 %v2284_v13 }
  0x20   : > { %694 = vperm.xlu1 %2197, %v2402_v10   ;;  %752 = vperm.xlu0 %2202, %v2402_v10  }
  0x24   : > { %2198 = vset.pattern.permute.xlu1 %v2285_v14  ;;  %2205 = vset.pattern.permute.xlu0 %v2286_v15 }
  0x25   : > { %713 = vperm.xlu1 %2198, %v2402_v10   ;;  %1040 = vperm.xlu0 %2205, %v2402_v10  }
  0x29   : > { %2200 = vset.pattern.permute.xlu1 %v2281_v9  ;;  %2208 = vset.pattern.permute.xlu0 %v3144_v16 }
  0x2a   : > { %818 = vperm.xlu1 %2200, %v2402_v10   ;;  %1060 = vperm.xlu0 %2208, %v2402_v10  }
  0x2e   : > { %2201 = vset.pattern.permute.xlu1 %v2288_v17  ;;  %2211 = vset.pattern.permute.xlu0 %v3142_v18 }
  0x2f   : > { %917 = vperm.xlu1 %2201, %v2402_v10   ;;  %1079 = vperm.xlu0 %2211, %v2402_v10  }
  0x33   : > { %2203 = vset.pattern.permute.xlu1 %v2290_v19  ;;  %2214 = vset.pattern.permute.xlu0 %v2277_v4 }
  0x34   : > { %838 = vperm.xlu1 %2203, %v2402_v10   ;;  %681 = vperm.xlu0 %2214, %v2402_v10  }
  0x38   : > { %2204 = vset.pattern.permute.xlu1 %v2291_v20  ;;  %2217 = vset.pattern.permute.xlu0 %v3138_v1 }
  0x39   : > { %936 = vperm.xlu1 %2204, %v2402_v10   ;;  %805 = vperm.xlu0 %2217, %v2402_v10  }
  0x3d   : > { %2206 = vset.pattern.permute.xlu1 %v2292_v22  ;;  %2220 = vset.pattern.permute.xlu0 %v3136_v5 }
  0x3e   : > { %858 = vperm.xlu1 %2206, %v2402_v10   ;;  %1027 = vperm.xlu0 %2220, %v2402_v10  }
  0x42   : > { %2207 = vset.pattern.permute.xlu1 %v2294_v28  ;;  %2222 = vset.pattern.permute.xlu0 %v2275_v2 }
  0x43   : > { %955 = vperm.xlu1 %2207, %v2402_v10   ;;  %1010 = vrot.lane.b32.xlu0 %v1009_v36, %s2296_s29  ;;  %v464_v36 = vrot.slane %v2517_v58, %v2474_v42 }
  0x47   : > { %2209 = vset.pattern.permute.xlu1 %v2295_v35 }
  0x48   : > { %877 = vperm.xlu1 %2209, %v2402_v10  }
  0x4c   : > { %2210 = vset.pattern.permute.xlu1 %v3143_v37 }
  0x4d   : > { %974 = vperm.xlu1 %2210, %v2402_v10  }
  0x51   : > { %2212 = vset.pattern.permute.xlu1 %v2298_v38 }
  0x52   : > { %1098 = vperm.xlu1 %2212, %v2402_v10  }
  0x56   : > { %2213 = vset.pattern.permute.xlu1 %v3141_v6 }
  0x57   : > { %573 = vperm.xlu1 %2213, %v2402_v10  }
  0x5b   : > { %2215 = vset.pattern.permute.xlu1 %v3140_v39 }
  0x5c   : > { %593 = vperm.xlu1 %2215, %v2402_v10  }
  0x60   : > { %2216 = vset.pattern.permute.xlu1 %v3139_v40 }
  0x61   : > { %614 = vperm.xlu1 %2216, %v2402_v10  }
  0x65   : > { %2218 = vset.pattern.permute.xlu1 %v3137_v3 }
  0x66   : > { %904 = vperm.xlu1 %2218, %v2402_v10  }
  0x6a   : > { %2219 = vset.pattern.permute.xlu1 %v3135_v49 }
  0x6b   : > { %634 = vperm.xlu1 %2219, %v2402_v10  }
  0x6f   : > { %788 = vrot.lane.b32.xlu1 %v787_v50, %s2302_s30 }
  0x70   : > { %2221 = vset.pattern.permute.xlu1 %v2275_v2 }
  0x86   : > { %v427_v56 = vpop.permute.xlu1 %426  ;;  %v395_v57 = vpop.permute.xlu0 %394 }
  0x87   : > { %v405_v29 = vmul.f32 %v400_v60, %v395_v57  ;;  %v406_v30 = vmul.f32 %v404_v61, %v395_v57  ;;  %v437_v44 = vmul.f32 %v432_v0, %v427_v56  ;;  %v438_v45 = vmul.f32 %v436_v7, %v427_v56 }
  0x88   : > { %v495_v57 = vsub.s32 6, %v2434_v23  ;;  %v511_v7 = vsub.s32 7, %v2434_v23 }
  0x8b   : > { %v443_v12 = vpop.permute.xlu1 %442  ;;  %v411_v25 = vpop.permute.xlu0 %410 }
  0x8c   : > { %v421_v31 = vmul.f32 %v416_v62, %v411_v25  ;;  %v422_v32 = vmul.f32 %v420_v63, %v411_v25  ;;  %v453_v60 = vmul.f32 %v448_v21, %v443_v12  ;;  %v454_v61 = vmul.f32 %v452_v24, %v443_v12 }
  0x8d   : > { %v512_v12 = vrot.slane %v2517_v58, %v511_v7  ;;  %v516_v24 = vrot.slane %v2520_v59, %v511_v7 }
  0x8e   : > { %v423_v46 = vadd.f32 %v421_v31, %v405_v29  ;;  %v424_v50 = vadd.f32 %v422_v32, %v406_v30  ;;  %v496_v31 = vrot.slane %v2517_v58, %v495_v57  ;;  %v500_v32 = vrot.slane %v2520_v59, %v495_v57 }
  0x90   : > { %v439_v62 = vadd.f32 %v437_v44, %v423_v46  ;;  %v440_v63 = vadd.f32 %v438_v45, %v424_v50  ;;  %v459_v25 = vpop.permute.xlu1 %458  ;;  %v475_v49 = vpop.permute.xlu0 %474 }
  0x91   : > { %v469_v5 = vmul.f32 %v464_v36, %v459_v25  ;;  %v470_v3 = vmul.f32 %v468_v43, %v459_v25  ;;  %v485_v29 = vmul.f32 %v480_v52, %v475_v49  ;;  %v486_v30 = vmul.f32 %v484_v53, %v475_v49 }
  0x92   : > { %v455_v0 = vadd.f32 %v453_v60, %v439_v62  ;;  %v456_v56 = vadd.f32 %v454_v61, %v440_v63 }
  0x94   : > { %v471_v1 = vadd.f32 %v469_v5, %v455_v0  ;;  %v472_v40 = vadd.f32 %v470_v3, %v456_v56 }
  0x95   : > { %v491_v21 = vpop.permute.xlu1 %490  ;;  %v525_v53 = vpop.permute.xlu0 %524 }
  0x96   : > { %v487_v44 = vadd.f32 %v485_v29, %v471_v1  ;;  %v488_v36 = vadd.f32 %v486_v30, %v472_v40  ;;  %v501_v43 = vmul.f32 %v496_v31, %v491_v21  ;;  %v502_v45 = vmul.f32 %v500_v32, %v491_v21 }
  0x98   : > { %v503_v50 = vadd.f32 %v501_v43, %v487_v44  ;;  %v504_v60 = vadd.f32 %v502_v45, %v488_v36 }
  0x9a   : > { %v507_v46 = vpop.permute.xlu1 %506 }
  0x9b   : > { %v517_v52 = vmul.f32 %v512_v12, %v507_v46  ;;  %v518_v49 = vmul.f32 %v516_v24, %v507_v46  ;;  %v2303_v12 = vmov 269488144  }
  0x9c   : > { %v563_v24 = vunpack.c.l.s4 %v2303_v12 }
  0x9d   : > { %v519_v61 = vadd.f32 %v517_v52, %v503_v50  ;;  %v520_v62 = vadd.f32 %v518_v49, %v504_v60  ;;  %v734_v49 = vpop.permute.xlu0 %733 }
  0x9e   : > { %v564_v50 = vunpack.c.0.s8 %v563_v24 }
  0x9f   : > { %v527_v57 = vadd.f32 %v525_v53, %v519_v61  ;;  %v528_v5 = vadd.f32 %v525_v53, %v520_v62  ;;  %v695_v3 = vpop.permute.xlu1 %694 }
  0xa0   : > { %v2562_v60 = vsub.s32 %v564_v50, %v2434_v23 }
  0xa1   : > { %v2129_v63 = vmul.f32 -1.442695, %v527_v57  ;;  %v2130_v25 = vmul.f32 -1.442695, %v528_v5 }
  0xa2   : > { %v741_v53 = vrot.slane %v734_v49, %v2562_v60  ;;  %v702_v61 = vrot.slane %v695_v3, %v2562_v60 }
  0xa3   : > { %2252 = vpow2.f32 %v2129_v63 }
  0xa4   : > { %2254 = vpow2.f32 %v2130_v25  ;;  %v714_v0 = vpop.permute.xlu1 %713 }
  0xa9   : > { %v819_v1 = vpop.permute.xlu1 %818 }
  0xad   : > { %v2253_v40 = vpop.eup %2252 }
  0xae   : > { %v2255_v56 = vpop.eup %2254  ;;  %v535_v7 = vadd.f32 1.0, %v2253_v40  ;;  %v918_v29 = vpop.permute.xlu1 %917 }
  0xaf   : > { %v536_v30 = vadd.f32 1.0, %v2255_v56  ;;  %v753_v40 = vpop.permute.xlu0 %752 }
  0xb0   : > { %2256 = vrcp.f32 %v535_v7  ;;  %v925_v7 = vrot.slane %v918_v29, %v2562_v60  ;;  %v826_v29 = vrot.slane %v819_v1, %v2562_v60  ;;  %v760_v49 = vrot.slane %v753_v40, %v2562_v60 }
  0xb1   : > { %2258 = vrcp.f32 %v536_v30  ;;  %v721_v30 = vrot.slane %v714_v0, %v2562_v60 }
  0xb3   : > { %v839_v31 = vpop.permute.xlu1 %838 }
  0xb8   : > { %v937_v32 = vpop.permute.xlu1 %936 }
  0xba   : > { %v2257_v21 = vpop.eup %2256 }
  0xbb   : > { %v2259_v44 = vpop.eup %2258  ;;  %v2555_v36 = vmul.f32 %v2257_v21, %v527_v57  ;;  %v846_v21 = vrot.slane %v839_v31, %v2562_v60 }
  0xbc   : > { %v2557_v43 = vmul.f32 %v2259_v44, %v528_v5 }
  0xbd   : > { %v859_v45 = vpop.permute.xlu1 %858 }
  0xbe   : > { %v546_v46 = vcombine.low %v2555_v36, %v2557_v43 }
  0xc0   : > { %2131 = vst.sshfl [vmem:[#allocation2 + $0x2] sm:$0x33 pattern:$0x76325410] %v546_v46  ;;  %v1041_v46 = vpop.permute.xlu0 %1040 }
  0xc1   : > { %v1048_v0 = vrot.slane %v1041_v46, %v2562_v60 }
  0xc2   : > { %v956_v52 = vpop.permute.xlu1 %955 }
  0xc3   : > { %v963_v46 = vrot.slane %v956_v52, %v2562_v60 }
  0xc7   : > { %v2566_v62 = vld [vmem:[#allocation2] sm:$0x3f]  ;;  %v878_v5 = vpop.permute.xlu1 %877 }
  0xc8   : > { %v731_v57 = vld [vmem:[#allocation2 + $0x2] sm:$0x3f]  ;;  %v704_v63 = vmul.f32 %v702_v61, %v2566_v62  ;;  %v723_v24 = vmul.f32 %v721_v30, %v2566_v62  ;;  %v944_v30 = vrot.slane %v937_v32, %v2562_v60 }
  0xc9   : > { %v743_v25 = vmul.f32 %v741_v53, %v731_v57  ;;  %v2569_v56 = vld [vmem:[#allocation2] sm:$0x3f] }
  0xca   : > { %706 = vrot.lane.b32.xlu1 %v704_v63, %s2305_s19  ;;  %v927_v3 = vmul.f32 %v925_v7, %v2569_v56  ;;  %v836_v44 = vld [vmem:[#allocation2 + $0x2] sm:$0xf]  ;;  %v828_v53 = vmul.f32 %v826_v29, %v2569_v56  ;;  %v866_v63 = vrot.slane %v859_v45, %v2562_v60 }
  0xcb   : > { %745 = vrot.lane.b32.xlu0 %v743_v25, %s2304_s16  ;;  %v848_v50 = vmul.f32 %v846_v21, %v836_v44  ;;  %v2584_v31 = vld [vmem:[#allocation2] sm:$0x3f]  ;;  %v762_v25 = vmul.f32 %v760_v49, %v731_v57 }
  0xcc   : > { %v975_v12 = vpop.permute.xlu1 %974  ;;  %v1050_v1 = vmul.f32 %v1048_v0, %v2584_v31  ;;  %v856_v7 = vld [vmem:[#allocation2 + $0x2] sm:$0x3f] }
  0xcd   : > { %v1058_v44 = vld [vmem:[#allocation2 + $0x2] sm:$0x3f]  ;;  %v946_v29 = vmul.f32 %v944_v30, %v856_v7  ;;  %v982_v32 = vrot.slane %v975_v12, %v2562_v60  ;;  %v965_v0 = vmul.f32 %v963_v46, %v856_v7 }
  0xce   : > { %725 = vrot.lane.b32.xlu1 %v723_v24, %s2306_s20  ;;  %v868_v24 = vmul.f32 %v866_v63, %v856_v7 }
  0xcf   : > { %929 = vrot.lane.b32.xlu0 %v927_v3, %s2305_s19  ;;  %v1061_v3 = vpop.permute.xlu0 %1060 }
  0xd0   : > { %v1068_v21 = vrot.slane %v1061_v3, %v2562_v60  ;;  %v2609_v3 = vld [vmem:[#allocation2] sm:$0x3f] }
  0xd1   : > { %v1099_v61 = vpop.permute.xlu1 %1098 }
  0xd2   : > { %830 = vrot.lane.b32.xlu1 %v828_v53, %s2305_s19  ;;  %v1070_v45 = vmul.f32 %v1068_v21, %v1058_v44  ;;  %v984_v53 = vmul.f32 %v982_v32, %v856_v7  ;;  %v1106_v30 = vrot.slane %v1099_v61, %v2562_v60  ;;  %v670_v32 = vrot.slane %v2499_v54, %v2451_v33 }
  0xd3   : > { %850 = vrot.lane.b32.xlu0 %v848_v50, %s2306_s20  ;;  %v885_v50 = vrot.slane %v878_v5, %v2562_v60  ;;  %v1080_v49 = vpop.permute.xlu0 %1079 }
  0xd5   : > { %v887_v52 = vmul.f32 %v885_v50, %v856_v7 }
  0xd6   : > { %v574_v40 = vpop.permute.xlu1 %573  ;;  %764 = vrot.lane.b32.xlu1 %v762_v25, %s2307_s21  ;;  %v1133_v25 = vrot.slane %v2481_v47, %v2451_v33 }
  0xd7   : > { %1052 = vrot.lane.b32.xlu0 %v1050_v1, %s2305_s19  ;;  %v1087_v1 = vrot.slane %v1080_v49, %v2562_v60  ;;  %v581_v12 = vrot.slane %v574_v40, %v2562_v60  ;;  %v612_v40 = vld [vmem:[#allocation2 + $0x2] sm:$0x3f] }
  0xd9   : > { %v1089_v5 = vmul.f32 %v1087_v1, %v1058_v44  ;;  %v583_v7 = vmul.f32 %v581_v12, %v2609_v3 }
  0xda   : > { %948 = vrot.lane.b32.xlu1 %v946_v29, %s2306_s20  ;;  %v1108_v29 = vmul.f32 %v1106_v30, %v1058_v44 }
  0xdb   : > { %870 = vrot.lane.b32.xlu0 %v868_v24, %s2304_s16  ;;  %v594_v57 = vpop.permute.xlu1 %593 }
  0xdc   : > { %v601_v46 = vrot.slane %v594_v57, %v2562_v60  ;;  %v682_v57 = vpop.permute.xlu0 %681 }
  0xde   : > { %967 = vrot.lane.b32.xlu1 %v965_v0, %s2304_s16  ;;  %v603_v0 = vmul.f32 %v601_v46, %v2609_v3 }
  0xdf   : > { %1072 = vrot.lane.b32.xlu0 %v1070_v45, %s2306_s20 }
  0xe0   : > { %v615_v63 = vpop.permute.xlu1 %614  ;;  %v806_v49 = vpop.permute.xlu0 %805 }
  0xe1   : > { %v622_v21 = vrot.slane %v615_v63, %v2562_v60 }
  0xe2   : > { %889 = vrot.lane.b32.xlu1 %v887_v52, %s2307_s21 }
  0xe3   : > { %986 = vrot.lane.b32.xlu0 %v984_v53, %s2307_s21  ;;  %v624_v61 = vmul.f32 %v622_v21, %v612_v40 }
  0xe4   : > { %v2628_v53 = vpop.permute.xlu0 %1027 }
  0xe5   : > { %v2614_v24 = vpop.permute.xlu1 %904 }
  0xe6   : > { %1091 = vrot.lane.b32.xlu1 %v1089_v5, %s2304_s16 }
  0xe7   : > { %1134 = vrot.lane.b32.xlu0 %v1133_v25, %s2308_s22  ;;  %v689_v25 = vrot.slane %v682_v57, %v2562_v60 }
  0xe8   : > { %v2630_v1 = vpop.permute.xlu0 %1010 }
  0xe9   : > { %v691_v21 = vmul.f32 %v689_v25, %v2566_v62 }
  0xea   : > { %1110 = vrot.lane.b32.xlu1 %v1108_v29, %s2307_s21  ;;  %v635_v45 = vpop.permute.xlu1 %634 }
  0xeb   : > { %585 = vrot.lane.b32.xlu0 %v583_v7, %s2305_s19  ;;  %v642_v44 = vrot.slane %v635_v45, %v2562_v60 }
  0xed   : > { %v644_v50 = vmul.f32 %v642_v44, %v612_v40 }
  0xee   : > { %560 = vperm.xlu1 %2221, %v2402_v10   ;;  %v789_v33 = vpop.permute.xlu1 %788 }
  0xef   : > { %626 = vrot.lane.b32.xlu0 %v624_v61, %s2304_s16 }
  0xf2   : > { %605 = vrot.lane.b32.xlu1 %v603_v0, %s2306_s20 }
  0xf3   : > { %671 = vrot.lane.b32.xlu0 %v670_v32, %s2309_s23 }
  0xf6   : > { %646 = vrot.lane.b32.xlu1 %v644_v50, %s2307_s21  ;;  %v790_v50 = vrot.slane %v789_v33, 6 }
 0x13c   : > { %v707_v52 = vpop.permute.xlu1 %706 }
 0x13d   : > { %v746_v10 = vpop.permute.xlu0 %745  ;;  %v708_v63 = vrot.slane %v707_v52, 2 }
 0x13e   : > { %v747_v45 = vrot.slane %v746_v10, 6 }
 0x13f   : > { %v709_v30 = vsel %vm588_vm0, %v707_v52, %v708_v63  ;;  %v813_v52 = vrot.slane %v806_v49, %v2562_v60 }
 0x140   : > { %v726_v5 = vpop.permute.xlu1 %725  ;;  %v711_v61 = vadd.f32 %v709_v30, %v691_v21  ;;  %v748_v57 = vsel %vm629_vm2, %v747_v45, %v746_v10  ;;  %v912_v30 = vrot.slane %v2614_v24, %v2562_v60 }
 0x141   : > { %v930_v12 = vpop.permute.xlu0 %929  ;;  %v727_v7 = vrot.slane %v726_v5, 2  ;;  %v815_v45 = vmul.f32 %v813_v52, %v2569_v56 }
 0x142   : > { %v931_v63 = vrot.slane %v930_v12, 2 }
 0x143   : > { %v728_v29 = vsel %vm608_vm1, %v726_v5, %v727_v7 }
 0x144   : > { %v831_v46 = vpop.permute.xlu1 %830  ;;  %v730_v32 = vadd.f32 %v728_v29, %v711_v61  ;;  %v792_v29 = vsel %vm791_vm4, %v790_v50, %v789_v33  ;;  %v932_v49 = vsel %vm588_vm0, %v930_v12, %v931_v63  ;;  %v1035_v63 = vrot.slane %v2628_v53, %v2562_v60 }
 0x145   : > { %v851_v40 = vpop.permute.xlu0 %850  ;;  %v832_v39 = vrot.slane %v831_v46, 2 }
 0x146   : > { %v750_v62 = vadd.f32 %v748_v57, %v730_v32  ;;  %v852_v32 = vrot.slane %v851_v40, 6 }
 0x147   : > { %v833_v61 = vsel %vm588_vm0, %v831_v46, %v832_v39  ;;  %v1149_v39 = vld [vmem:[%s3127_s4] sm:$0x3] }
 0x148   : > { %v765_v44 = vpop.permute.xlu1 %764  ;;  %v853_v12 = vsel %vm608_vm1, %v852_v32, %v851_v40 }
 0x149   : > { %v1053_v0 = vpop.permute.xlu0 %1052  ;;  %v766_v6 = vrot.slane %v765_v44, 6 }
 0x14a   : > { %v1054_v50 = vrot.slane %v1053_v0, 2 }
 0x14b   : > { %v767_v25 = vsel %vm649_vm3, %v766_v6, %v765_v44  ;;  %v914_v6 = vmul.f32 %v912_v30, %v2569_v56  ;;  %v835_v44 = vadd.f32 %v833_v61, %v815_v45  ;;  %v1012_v45 = vrot.slane %v2630_v1, 6 }
 0x14c   : > { %v769_v7 = vadd.f32 %v767_v25, %v750_v62  ;;  %v949_v21 = vpop.permute.xlu1 %948 }
 0x14d   : > { %v871_v5 = vpop.permute.xlu0 %870  ;;  %v950_v10 = vrot.slane %v949_v21, 6  ;;  %v934_v46 = vadd.f32 %v932_v49, %v914_v6  ;;  %v1037_v49 = vmul.f32 %v1035_v63, %v2584_v31 }
 0x14e   : > { %v794_v18 = vmul.f32 %v792_v29, %v769_v7  ;;  %v872_v57 = vrot.slane %v871_v5, 6 }
 0x14f   : > { %v951_v24 = vsel %vm608_vm1, %v950_v10, %v949_v21 }
 0x150   : > { %v968_v16 = vpop.permute.xlu1 %967  ;;  %796 = vrot.lane.b32.xlu1 %v794_v18, %s3145_s24  ;;  %v873_v52 = vsel %vm629_vm2, %v872_v57, %v871_v5  ;;  %v855_v18 = vadd.f32 %v853_v12, %v835_v44  ;;  %v953_v25 = vadd.f32 %v951_v24, %v934_v46  ;;  %v1055_v5 = vsel %vm588_vm0, %v1053_v0, %v1054_v50  ;;  %s2314_s24 = smov 34  }
 0x151   : > { %v1073_v37 = vpop.permute.xlu0 %1072  ;;  %v969_v33 = vrot.slane %v968_v16, 6  ;;  %v1057_v24 = vadd.f32 %v1055_v5, %v1037_v49  ;;  %v1014_v0 = vsel %vm1013_vm5, %v1012_v45, %v2630_v1  ;;  %v1204_v1 = vld [vmem:[%s3129_s6] sm:$0xf] }
 0x152   : > { %v1074_v21 = vrot.slane %v1073_v37, 6  ;;  %v875_v61 = vadd.f32 %v873_v52, %v855_v18 }
 0x153   : > { %v970_v56 = vsel %vm629_vm2, %v969_v33, %v968_v16 }
 0x154   : > { %v890_v7 = vpop.permute.xlu1 %889  ;;  %1152 = vperm.xlu1 %2221, %v1149_v39   ;;  %v972_v10 = vadd.f32 %v970_v56, %v953_v25  ;;  %v1075_v6 = vsel %vm608_vm1, %v1074_v21, %v1073_v37  ;;  %v1170_v25 = vld [vmem:[%s3128_s5] sm:$0xf] }
 0x155   : > { %v987_v62 = vpop.permute.xlu0 %986  ;;  %v891_v29 = vrot.slane %v890_v7, 6  ;;  %v1077_v46 = vadd.f32 %v1075_v6, %v1057_v24 }
 0x156   : > { %v988_v30 = vrot.slane %v987_v62, 6 }
 0x157   : > { %v892_v16 = vsel %vm649_vm3, %v891_v29, %v890_v7  ;;  %v1297_v7 = vld [vmem:[%s3130_s7] sm:$0xf] }
 0x158   : > { %v989_v40 = vsel %vm649_vm3, %v988_v30, %v987_v62  ;;  %v1092_v32 = vpop.permute.xlu1 %1091  ;;  %v894_v57 = vadd.f32 %v892_v16, %v875_v61  ;;  %2223 = vset.pattern.permute.xlu1 %v2277_v4  ;;  %v2681_v30 = vld [vmem:[%s3131_s8] sm:$0xf] }
 0x159   : > { %v991_v53 = vadd.f32 %v989_v40, %v972_v10  ;;  %v1093_v44 = vrot.slane %v1092_v32, 6  ;;  %v1135_v33 = vpop.permute.xlu0 %1134 }
 0x15a   : > { %896 = vrot.lane.b32.xlu0 %v894_v57, %s3149_s27  ;;  %v1136_v39 = vrot.slane %v1135_v33, 6  ;;  %s2865_s27 = scalar_lea.vmem %s3134_s11, %s2136_s12 }
 0x15b   : > { %v1094_v31 = vsel %vm629_vm2, %v1093_v44, %v1092_v32  ;;  %v1016_v50 = vmul.f32 %v1014_v0, %v991_v53 }
 0x15c   : > { %v1111_v12 = vpop.permute.xlu1 %1110  ;;  %v1096_v56 = vadd.f32 %v1094_v31, %v1077_v46  ;;  %v1138_v37 = vsel %vm1137_vm6, %v1136_v39, %v1135_v33 }
 0x15d   : > { %v1112_v52 = vrot.slane %v1111_v12, 6 }
 0x15e   : > { %1018 = vrot.lane.b32.xlu0 %v1016_v50, %s3147_s28 }
 0x15f   : > { %v1113_v62 = vsel %vm649_vm3, %v1112_v52, %v1111_v12 }
 0x160   : > { %v1115_v63 = vadd.f32 %v1113_v62, %v1096_v56 }
 0x162   : > { %1207 = vperm.xlu0 %2222, %v1204_v1   ;;  %v1140_v18 = vmul.f32 %v1138_v37, %v1115_v63 }
 0x164   : > { %1142 = vrot.lane.b32.xlu1 %v1140_v18, %s2313_s25 }
 0x166   : > { %2225 = vset.pattern.permute.xlu0 %v2277_v4 }
 0x167   : > { %1189 = vperm.xlu0 %2225, %v1170_v25  }
 0x168   : > { %1245 = vperm.xlu1 %2223, %v1204_v1  }
 0x16b   : > { %2226 = vset.pattern.permute.xlu0 %v2280_v8  ;;  %v3151_v8 = vmov 14  }
 0x16c   : > { %2224 = vset.pattern.permute.xlu1 %v2275_v2  ;;  %1468 = vperm.xlu0 %2226, %v2681_v30  }
 0x16d   : > { %1173 = vperm.xlu1 %2224, %v1170_v25  }
 0x170   : > { %2229 = vset.pattern.permute.xlu0 %v2288_v17 }
 0x171   : > { %1300 = vperm.xlu1 %2224, %v1297_v7   ;;  %1747 = vperm.xlu0 %2229, %v2681_v30  }
 0x175   : > { %2227 = vset.pattern.permute.xlu1 %v2285_v14  ;;  %2232 = vset.pattern.permute.xlu0 %v2284_v13  ;;  %v3154_v13 = vmov 5   ;;  %v561_v14 = vpop.permute.xlu1 %560 }
 0x176   : > { %1495 = vperm.xlu1 %2227, %v2681_v30   ;;  %1550 = vperm.xlu0 %2232, %v2681_v30   ;;  %v568_v17 = vrot.slane %v561_v14, %v2562_v60  ;;  %v1199_v14 = vrot.slane %v2557_v43, %v2471_v41 }
 0x17a   : > { %2228 = vset.pattern.permute.xlu1 %v2281_v9  ;;  %2235 = vset.pattern.permute.xlu0 %v2292_v22  ;;  %v3152_v9 = vmov 23   ;;  %v570_v22 = vmul.f32 %v568_v17, %v2609_v3 }
 0x17b   : > { %1615 = vperm.xlu1 %2228, %v2681_v30   ;;  %1666 = vperm.xlu0 %2235, %v2681_v30  }
 0x17f   : > { %2230 = vset.pattern.permute.xlu1 %v2282_v11  ;;  %2238 = vset.pattern.permute.xlu0 %v2295_v35  ;;  %v3153_v11 = vmov 19  }
 0x180   : > { %1524 = vperm.xlu1 %2230, %v2681_v30   ;;  %1692 = vperm.xlu0 %2238, %v2681_v30  }
 0x184   : > { %2231 = vset.pattern.permute.xlu1 %v2286_v15  ;;  %2241 = vset.pattern.permute.xlu0 %v2298_v38  ;;  %v586_v15 = vpop.permute.xlu0 %585 }
 0x185   : > { %1891 = vperm.xlu1 %2231, %v2681_v30  }
 0x188   : > { %v627_v38 = vpop.permute.xlu0 %626 }
 0x189   : > { %2233 = vset.pattern.permute.xlu1 %v2290_v19  ;;  %v606_v19 = vpop.permute.xlu1 %605  ;;  %v628_v10 = vrot.slane %v627_v38, 6 }
 0x18a   : > { %1643 = vperm.xlu1 %2233, %v2681_v30  }
 0x18b   : > { %v630_v16 = vsel %vm629_vm2, %v628_v10, %v627_v38 }
 0x18c   : > { %v672_v5 = vpop.permute.xlu0 %671 }
 0x18d   : > { %v647_v61 = vpop.permute.xlu1 %646  ;;  %v673_v57 = vrot.slane %v672_v5, 6 }
 0x18e   : > { %2234 = vset.pattern.permute.xlu1 %v2291_v20  ;;  %v587_v20 = vrot.slane %v586_v15, 2  ;;  %v648_v45 = vrot.slane %v647_v61, 6 }
 0x18f   : > { %1774 = vperm.xlu1 %2234, %v2681_v30   ;;  %v675_v24 = vsel %vm674_vm7, %v673_v57, %v672_v5 }
 0x190   : > { %v589_v35 = vsel %vm588_vm0, %v586_v15, %v587_v20  ;;  %v650_v32 = vsel %vm649_vm3, %v648_v45, %v647_v61 }
 0x191   : > { %v591_v21 = vadd.f32 %v589_v35, %v570_v22 }
 0x193   : > { %2236 = vset.pattern.permute.xlu1 %v2294_v28  ;;  %v607_v28 = vrot.slane %v606_v19, 2 }
 0x194   : > { %1800 = vperm.xlu1 %2236, %v2681_v30  }
 0x195   : > { %v609_v29 = vsel %vm608_vm1, %v606_v19, %v607_v28  ;;  %v1179_v28 = vrot.slane %v2555_v36, %v2493_v51 }
 0x196   : > { %v611_v40 = vadd.f32 %v609_v29, %v591_v21 }
 0x198   : > { %2237 = vset.pattern.permute.xlu1 %v3151_v8  ;;  %v632_v49 = vadd.f32 %v630_v16, %v611_v40 }
 0x199   : > { %1920 = vperm.xlu1 %2237, %v2681_v30  }
 0x19a   : > { %v652_v44 = vadd.f32 %v650_v32, %v632_v49 }
 0x19c   : > { %v677_v46 = vmul.f32 %v675_v24, %v652_v44 }
 0x19d   : > { %2239 = vset.pattern.permute.xlu1 %v3152_v9 }
 0x19e   : > { %1826 = vperm.xlu1 %2239, %v2681_v30  }
 0x1a2   : > { %2240 = vset.pattern.permute.xlu1 %v3153_v11 }
 0x1a3   : > { %1946 = vperm.xlu1 %2240, %v2681_v30  }
 0x1a7   : > { %2242 = vset.pattern.permute.xlu1 %v3154_v13  ;;  %v1195_v13 = vrot.slane %v2555_v36, %v2471_v41 }
 0x1c2   : > { %v797_v53 = vpop.permute.xlu1 %796 }
 0x1c3   : > { %v798_v6 = vrot.slane %v797_v53, 2 }
 0x1c5   : > { %v800_v39 = vsel %vm799_vm8, %v797_v53, %v798_v6 }
 0x1c6   : > { %v802_v52 = vadd.f32 %v800_v39, %v677_v46 }
 0x1cc   : > { %v897_v3 = vpop.permute.xlu0 %896 }
 0x1cd   : > { %v898_v33 = vrot.slane %v897_v3, 2 }
 0x1cf   : > { %v900_v50 = vsel %vm899_vm9, %v897_v3, %v898_v33 }
 0x1d0   : > { %v1019_v0 = vpop.permute.xlu0 %1018  ;;  %v902_v37 = vadd.f32 %v900_v50, %v802_v52 }
 0x1d1   : > { %v1020_v31 = vrot.slane %v1019_v0, 2 }
 0x1d3   : > { %v1153_v12 = vpop.permute.xlu1 %1152  ;;  %v1022_v56 = vsel %vm1021_vm10, %v1019_v0, %v1020_v31 }
 0x1d4   : > { %v1024_v63 = vadd.f32 %v1022_v56, %v902_v37  ;;  %v1160_v25 = vrot.slane %v1153_v12, %v2562_v60  ;;  %v1183_v60 = vrot.slane %v2557_v43, %v2493_v51 }
 0x1d7   : > { %v1143_v62 = vpop.permute.xlu1 %1142 }
 0x1d8   : > { %v1144_v1 = vrot.slane %v1143_v62, 2 }
 0x1da   : > { %v1146_v18 = vsel %vm1145_vm11, %v1143_v62, %v1144_v1  ;;  %v3155_v1 = vmov 10  }
 0x1db   : > { %v1148_v7 = vadd.f32 %v1146_v18, %v1024_v63 }
 0x1dd   : > { %v1162_v8 = vadd.f32 %v1160_v25, %v1148_v7  ;;  %v3156_v7 = vmov 15  }
 0x1df   : > { %v2132_v9 = vmul.f32 -1.442695, %v1162_v8 }
 0x1e1   : > { %2260 = vpow2.f32 %v2132_v9  ;;  %v1208_v11 = vpop.permute.xlu0 %1207 }
 0x1e6   : > { %v1190_v15 = vpop.permute.xlu0 %1189 }
 0x1e7   : > { %v1200_v17 = vmul.f32 %v1195_v13, %v1190_v15  ;;  %v1201_v19 = vmul.f32 %v1199_v14, %v1190_v15  ;;  %v1246_v20 = vpop.permute.xlu1 %1245  ;;  %v3157_v14 = vmov 2   ;;  %v3158_v15 = vmov 3  }
 0x1eb   : > { %v2261_v22 = vpop.eup %2260  ;;  %v2782_v9 = vpop.permute.xlu0 %1468 }
 0x1ec   : > { %v1166_v35 = vadd.f32 1.0, %v2261_v22  ;;  %v1174_v38 = vpop.permute.xlu1 %1173 }
 0x1ed   : > { %v1184_v21 = vmul.f32 %v1179_v28, %v1174_v38  ;;  %v1185_v29 = vmul.f32 %v1183_v60, %v1174_v38 }
 0x1ee   : > { %2262 = vrcp.f32 %v1166_v35  ;;  %v1522_v35 = vld [vmem:[#allocation3 + $0xc] sm:$0xf] }
 0x1ef   : > { %v2739_v61 = vadd.f32 %v1200_v17, %v1184_v21  ;;  %v2741_v10 = vadd.f32 %v1201_v19, %v1185_v29  ;;  %v3160_v21 = vmov 20  }
 0x1f0   : > { %v2743_v40 = vpop.permute.xlu1 %1300  ;;  %v2791_v17 = vpop.permute.xlu0 %1747 }
 0x1f5   : > { %v2745_v45 = vpop.permute.xlu1 %1495 }
 0x1f8   : > { %v2263_v5 = vpop.eup %2262 }
 0x1f9   : > { %v1169_v16 = vmul.f32 %v2263_v5, %v1162_v8 }
 0x1fa   : > { %v2747_v49 = vpop.permute.xlu1 %1615 }
 0x1fb   : > { %v1214_v36 = vrot.slane %v1169_v16, %v2493_v51  ;;  %v1218_v43 = vrot.slane %v1169_v16, %v2514_v55  ;;  %v1222_v53 = vrot.slane %v1169_v16, %v2474_v42  ;;  %v1251_v32 = vrot.slane %v1169_v16, %v2471_v41 }
 0x1fc   : > { %v1255_v57 = vrot.slane %v1169_v16, %v2437_v26  ;;  %v1259_v3 = vrot.slane %v1169_v16, %v2539_v27 }
 0x1fd   : > { %v1229_v6 = vrot.slane %v1214_v36, %v2493_v51  ;;  %v1233_v44 = vrot.slane %v1218_v43, %v2493_v51  ;;  %v1237_v24 = vrot.slane %v1222_v53, %v2493_v51  ;;  %v1266_v33 = vrot.slane %v1251_v32, %v2471_v41  ;;  %v2814_v36 = vld [vmem:[#allocation3 + $0xc] sm:$0xf] }
 0x1fe   : > { %v1270_v0 = vrot.slane %v1255_v57, %v2471_v41  ;;  %v1274_v55 = vrot.slane %v1259_v3, %v2471_v41  ;;  %v2315_v41 = vmov 839922192  }
 0x1ff   : > { %v1238_v39 = vmul.f32 %v1229_v6, %v1208_v11  ;;  %v1239_v42 = vmul.f32 %v1233_v44, %v1208_v11  ;;  %v1275_v31 = vmul.f32 %v1266_v33, %v1246_v20  ;;  %v1525_v46 = vpop.permute.xlu1 %1524  ;;  %v1240_v26 = vmul.f32 %v1237_v24, %v1208_v11  ;;  %v1664_v11 = vld [vmem:[#allocation3 + $0xc] sm:$0xf] }
 0x200   : > { %v1276_v12 = vmul.f32 %v1270_v0, %v1246_v20  ;;  %v1277_v50 = vmul.f32 %v1274_v55, %v1246_v20  ;;  %v1320_v37 = vunpack.c.l.s4 %v2315_v41  ;;  %v3159_v20 = vmov 4  }
 0x201   : > { %v1278_v27 = vadd.f32 %v1275_v31, %v1238_v39 }
 0x202   : > { %v1279_v52 = vadd.f32 %v1276_v12, %v1239_v42  ;;  %v1280_v56 = vadd.f32 %v1277_v50, %v1240_v26  ;;  %v1321_v63 = vunpack.c.0.s8 %v1320_v37 }
 0x203   : > { %1284 = vrot.lane.b32.xlu1 %v1278_v27, %s2314_s24 }
 0x204   : > { %1286 = vrot.lane.b32.xlu0 %v1279_v52, %s2314_s24  ;;  %v2763_v51 = vpop.permute.xlu1 %1891  ;;  %v2775_v25 = vsub.s32 %v1321_v63, %v2434_v23 }
 0x206   : > { %v2801_v28 = vrot.slane %v1525_v46, %v2775_v25 }
 0x207   : > { %1288 = vrot.lane.b32.xlu1 %v1280_v56, %s2314_s24 }
 0x208   : > { %1972 = vperm.xlu0 %2241, %v2681_v30   ;;  %v1535_v5 = vmul.f32 %v2801_v28, %v1522_v35 }
 0x209   : > { %v2767_v62 = vpop.permute.xlu1 %1643 }
 0x20b   : > { %1332 = vperm.xlu1 %2242, %v2681_v30  }
 0x20c   : > { %2244 = vset.pattern.permute.xlu0 %v3155_v1 }
 0x20d   : > { %1360 = vperm.xlu0 %2244, %v2681_v30  }
 0x20e   : > { %v1775_v18 = vpop.permute.xlu1 %1774 }
 0x20f   : > { %2243 = vset.pattern.permute.xlu1 %v2277_v4  ;;  %v2780_v8 = vrot.slane %v1775_v18, %v2775_v25  ;;  %v1503_v18 = vrot.slane %v2745_v45, %v2775_v25 }
 0x210   : > { %1453 = vperm.xlu1 %2243, %v2681_v30  }
 0x211   : > { %2247 = vset.pattern.permute.xlu0 %v3156_v7  ;;  %v1785_v4 = vmul.f32 %v2780_v8, %v1664_v11 }
 0x212   : > { %1389 = vperm.xlu0 %2247, %v2681_v30  }
 0x213   : > { %v1801_v13 = vpop.permute.xlu1 %1800 }
 0x214   : > { %2245 = vset.pattern.permute.xlu1 %v3157_v14  ;;  %v2828_v6 = vrot.slane %v1801_v13, %v2775_v25 }
 0x215   : > { %1600 = vperm.xlu1 %2245, %v2681_v30  }
 0x216   : > { %1575 = vrot.lane.b32.xlu0 %v2484_v48, %s2302_s30  ;;  %v1551_v48 = vpop.permute.xlu0 %1550  ;;  %v1811_v44 = vmul.f32 %v2828_v6, %v1664_v11 }
 0x217   : > { %2250 = vset.pattern.permute.xlu0 %v2275_v2  ;;  %v2812_v16 = vrot.slane %v1551_v48, %v2775_v25 }
 0x218   : > { %v1921_v23 = vpop.permute.xlu1 %1920 }
 0x219   : > { %2246 = vset.pattern.permute.xlu1 %v3158_v15  ;;  %v1561_v32 = vmul.f32 %v2812_v16, %v1522_v35  ;;  %v2833_v24 = vrot.slane %v1921_v23, %v2775_v25  ;;  %v1899_v35 = vrot.slane %v2763_v51, %v2775_v25 }
 0x21a   : > { %1732 = vperm.xlu1 %2246, %v2681_v30   ;;  %1790 = vrot.lane.b32.xlu0 %v1785_v4, %s2306_s20  ;;  %v1667_v43 = vpop.permute.xlu0 %1666 }
 0x21b   : > { %v2822_v57 = vrot.slane %v1667_v43, %v2775_v25  ;;  %v1931_v0 = vmul.f32 %v2833_v24, %v2814_v36 }
 0x21d   : > { %v1827_v19 = vpop.permute.xlu1 %1826  ;;  %v1677_v3 = vmul.f32 %v2822_v57, %v1664_v11 }
 0x21e   : > { %2248 = vset.pattern.permute.xlu1 %v3159_v20  ;;  %v2797_v22 = vrot.slane %v1827_v19, %v2775_v25  ;;  %v1693_v33 = vpop.permute.xlu0 %1692  ;;  %v1755_v19 = vrot.slane %v2791_v17, %v2775_v25 }
 0x21f   : > { %1876 = vperm.xlu1 %2248, %v2681_v30  }
 0x220   : > { %v1837_v60 = vmul.f32 %v2797_v22, %v1664_v11 }
 0x222   : > { %v1947_v38 = vpop.permute.xlu1 %1946  ;;  %1842 = vrot.lane.b32.xlu0 %v1837_v60, %s2307_s21 }
 0x223   : > { %2249 = vset.pattern.permute.xlu1 %v3160_v21  ;;  %v2807_v29 = vrot.slane %v1947_v38, %v2775_v25 }
 0x224   : > { %1415 = vperm.xlu1 %2249, %v2681_v30  }
 0x225   : > { %v1957_v53 = vmul.f32 %v2807_v29, %v2814_v36 }
 0x227   : > { %1962 = vrot.lane.b32.xlu0 %v1957_v53, %s2304_s16 }
 0x228   : > { %1540 = vrot.lane.b32.xlu1 %v1535_v5, %s2304_s16 }
 0x229   : > { %2251 = vset.pattern.permute.xlu1 %v2275_v2  ;;  %v2839_v2 = vrot.slane %v1693_v33, %v2775_v25 }
 0x22b   : > { %v1703_v55 = vmul.f32 %v2839_v2, %v1664_v11 }
 0x22c   : > { %1566 = vrot.lane.b32.xlu1 %v1561_v32, %s2307_s21 }
 0x230   : > { %1682 = vrot.lane.b32.xlu1 %v1677_v3, %s2304_s16 }
 0x234   : > { %1816 = vrot.lane.b32.xlu1 %v1811_v44, %s2304_s16 }
 0x238   : > { %1936 = vrot.lane.b32.xlu1 %v1931_v0, %s2306_s20 }
 0x23c   : > { %1708 = vrot.lane.b32.xlu1 %v1703_v55, %s2307_s21 }
 0x240   : > { %1851 = vrot.lane.b32.xlu1 %v2453_v34, %s2296_s29  ;;  %v1651_v34 = vrot.slane %v2767_v62, %v2775_v25 }
 0x275   : > { %v1285_v39 = vpop.permute.xlu1 %1284 }
 0x276   : > { %v1287_v42 = vpop.permute.xlu0 %1286 }
 0x277   : > { %v1291_v31 = vsel %vm1290_vm12, %v1285_v39, %v1287_v42 }
 0x278   : > { %v1295_v46 = vadd.f32 %v1291_v31, %v2739_v61 }
 0x279   : > { %v1289_v12 = vpop.permute.xlu1 %1288 }
 0x27a   : > { %v1292_v26 = vsel %vm1290_vm12, %v1287_v42, %v1289_v12  ;;  %v1303_v27 = vadd.f32 %v2743_v40, %v1295_v46 }
 0x27b   : > { %v1296_v50 = vadd.f32 %v1292_v26, %v2741_v10  ;;  %v1387_v26 = vld [vmem:[#allocation3 + $0xc] sm:$0xf] }
 0x27c   : > { %v2034_v37 = vadd.f32 %v1303_v27, %v2517_v58 }
 0x27d   : > { %v1304_v52 = vadd.f32 %v2743_v40, %v1296_v50  ;;  %v1476_v40 = vrot.slane %v2782_v9, %v2775_v25  ;;  %v1623_v9 = vrot.slane %v2747_v49, %v2775_v25 }
 0x27f   : > { %v2854_v56 = vcombine.low %v1303_v27, %v1304_v52  ;;  %v2035_v41 = vadd.f32 %v1304_v52, %v2520_v59 }
 0x281   : > { %1311 = vst [vmem:[#allocation3 + $0x4] sm:$0xff] %v2854_v56  ;;  %v1653_v61 = vmul.f32 %v1651_v34, %v2854_v56  ;;  %v2038_v10 = vcombine.low %v2034_v37, %v2035_v41  ;;  %v1534_v5 = vmul.f32 %v2801_v28, %v2854_v56  ;;  %v1676_v0 = vmul.f32 %v2822_v57, %v2854_v56 }
 0x282   : > { %v1560_v55 = vmul.f32 %v2812_v16, %v2854_v56  ;;  %v1810_v31 = vmul.f32 %v2828_v6, %v2854_v56  ;;  %v1784_v46 = vmul.f32 %v2780_v8, %v2854_v56  ;;  %v1930_v16 = vmul.f32 %v2833_v24, %v2854_v56 }
 0x283   : > { %2040 = vst [vmem:[%s2865_s27] sm:$0xff] %v2038_v10  ;;  %v1702_v8 = vmul.f32 %v2839_v2, %v2854_v56  ;;  %v1836_v52 = vmul.f32 %v2797_v22, %v2854_v56  ;;  %v1956_v2 = vmul.f32 %v2807_v29, %v2854_v56 }
 0x287   : > { %v1973_v3 = vpop.permute.xlu0 %1972 }
 0x288   : > { %v2870_v62 = vld [vmem:[#allocation3] sm:$0xff]  ;;  %v1451_v59 = vld [vmem:[#allocation3 + $0x8] sm:$0xf]  ;;  %v1980_v42 = vrot.slane %v1973_v3, %v2775_v25 }
 0x289   : > { %v1479_v58 = vmul.f32 %v1476_v40, %v1451_v59  ;;  %v1478_v1 = vmul.f32 %v1476_v40, %v2870_v62  ;;  %v1506_v7 = vmul.f32 %v1503_v18, %v1451_v59  ;;  %v1505_v11 = vmul.f32 %v1503_v18, %v2870_v62  ;;  %v1598_v13 = vld [vmem:[#allocation3 + $0x8] sm:$0xf] }
 0x28a   : > { %v2873_v63 = vpop.permute.xlu1 %1332  ;;  %v1626_v45 = vmul.f32 %v1623_v9, %v1598_v13  ;;  %v1625_v23 = vmul.f32 %v1623_v9, %v2870_v62  ;;  %v1758_v48 = vmul.f32 %v1755_v19, %v1598_v13  ;;  %v1757_v60 = vmul.f32 %v1755_v19, %v2870_v62  ;;  %v1874_v53 = vld [vmem:[#allocation3 + $0x8] sm:$0xf] }
 0x28b   : > { %1484 = vrot.lane.b32.xlu1 %v1479_v58, %s2305_s19  ;;  %1482 = vrot.lane.b32.xlu0 %v1478_v1, %s2305_s19  ;;  %v1901_v21 = vmul.f32 %v1899_v35, %v2870_v62  ;;  %v1902_v32 = vmul.f32 %v1899_v35, %v1874_v53  ;;  %v1982_v57 = vmul.f32 %v1980_v42, %v2854_v56  ;;  %v2968_v29 = vld [vmem:[#allocation3 + $0x8] sm:$0xf] }
 0x28c   : > { %v1361_v39 = vpop.permute.xlu0 %1360  ;;  %v1983_v41 = vmul.f32 %v1980_v42, %v2814_v36  ;;  %v1340_v22 = vrot.slane %v2873_v63, %v2775_v25 }
 0x28d   : > { %v1368_v10 = vrot.slane %v1361_v39, %v2775_v25 }
 0x28e   : > { %v1342_v37 = vmul.f32 %v1340_v22, %v2870_v62 }
 0x28f   : > { %1511 = vrot.lane.b32.xlu1 %v1506_v7, %s2306_s20  ;;  %1509 = vrot.lane.b32.xlu0 %v1505_v11, %s2306_s20  ;;  %v1454_v14 = vpop.permute.xlu1 %1453  ;;  %v1370_v36 = vmul.f32 %v1368_v10, %v2870_v62  ;;  %v1371_v40 = vmul.f32 %v1368_v10, %v2968_v29 }
 0x290   : > { %v2885_v4 = vrot.slane %v1454_v14, %v2775_v25 }
 0x291   : > { %v1390_v12 = vpop.permute.xlu0 %1389 }
 0x292   : > { %v2889_v15 = vmul.f32 %v2885_v4, %v1451_v59  ;;  %v1397_v6 = vrot.slane %v1390_v12, %v2775_v25 }
 0x293   : > { %1631 = vrot.lane.b32.xlu1 %v1626_v45, %s2305_s19  ;;  %1629 = vrot.lane.b32.xlu0 %v1625_v23, %s2305_s19 }
 0x294   : > { %v1601_v49 = vpop.permute.xlu1 %1600  ;;  %v1400_v27 = vmul.f32 %v1397_v6, %v1387_v26 }
 0x295   : > { %v2896_v20 = vrot.slane %v1601_v49, %v2775_v25  ;;  %v2989_v63 = vpop.permute.xlu0 %1575 }
 0x296   : > { %v1577_v12 = vrot.slane %v2989_v63, 4 }
 0x297   : > { %v2902_v38 = vmul.f32 %v2896_v20, %v1598_v13  ;;  %1763 = vrot.lane.b32.xlu1 %v1758_v48, %s2305_s19  ;;  %1761 = vrot.lane.b32.xlu0 %v1757_v60, %s2305_s19 }
 0x299   : > { %v1733_v17 = vpop.permute.xlu1 %1732  ;;  %v2993_v7 = vpop.permute.xlu0 %1790 }
 0x29a   : > { %v2910_v43 = vrot.slane %v1733_v17, %v2775_v25 }
 0x29b   : > { %1905 = vrot.lane.b32.xlu1 %v1901_v21, %s2305_s19  ;;  %1538 = vrot.lane.b32.xlu0 %v1534_v5, %s2304_s16 }
 0x29c   : > { %v2915_v51 = vmul.f32 %v2910_v43, %v1598_v13 }
 0x29d   : > { %v2997_v13 = vpop.permute.xlu0 %1842 }
 0x29e   : > { %v1877_v44 = vpop.permute.xlu1 %1876 }
 0x29f   : > { %v2918_v33 = vrot.slane %v1877_v44, %v2775_v25  ;;  %1655 = vrot.lane.b32.xlu1 %v1653_v61, %s2306_s20  ;;  %1907 = vrot.lane.b32.xlu0 %v1902_v32, %s2305_s19  ;;  %v1343_v61 = vmul.f32 %v1340_v22, %v2968_v29 }
 0x2a1   : > { %v2923_v28 = vmul.f32 %v2918_v33, %v1874_v53  ;;  %v3003_v14 = vpop.permute.xlu0 %1962 }
 0x2a3   : > { %1680 = vrot.lane.b32.xlu1 %v1676_v0, %s2304_s16  ;;  %1564 = vrot.lane.b32.xlu0 %v1560_v55, %s2307_s21  ;;  %v1416_v50 = vpop.permute.xlu1 %1415 }
 0x2a4   : > { %v1423_v24 = vrot.slane %v1416_v50, %v2775_v25 }
 0x2a6   : > { %v1426_v34 = vmul.f32 %v1423_v24, %v1387_v26  ;;  %v1425_v59 = vmul.f32 %v1423_v24, %v2854_v56  ;;  %v1610_v24 = vmul.f32 %v2896_v20, %v2870_v62 }
 0x2a7   : > { %1814 = vrot.lane.b32.xlu1 %v1810_v31, %s2304_s16  ;;  %1788 = vrot.lane.b32.xlu0 %v1784_v46, %s2306_s20  ;;  %v2983_v58 = vpop.permute.xlu1 %1540 }
 0x2ab   : > { %1986 = vrot.lane.b32.xlu1 %v1982_v57, %s2307_s21  ;;  %1934 = vrot.lane.b32.xlu0 %v1930_v16, %s2306_s20 }
 0x2af   : > { %1997 = vrot.lane.b32.xlu1 %v2481_v47, %s2308_s22  ;;  %1706 = vrot.lane.b32.xlu0 %v1702_v8, %s2307_s21  ;;  %v2019_v47 = vld [vmem:[%s3132_s9] sm:$0xf] }
 0x2b3   : > { %1405 = vrot.lane.b32.xlu1 %v1400_v27, %s2304_s16  ;;  %1840 = vrot.lane.b32.xlu0 %v1836_v52, %s2307_s21  ;;  %v1463_v27 = vmul.f32 %v2885_v4, %v2870_v62  ;;  %v1886_v4 = vmul.f32 %v2918_v33, %v2870_v62 }
 0x2b7   : > { %1960 = vrot.lane.b32.xlu0 %v1956_v2, %s2304_s16  ;;  %1431 = vrot.lane.b32.xlu1 %v1426_v34, %s2307_s21 }
 0x2bb   : > { %1988 = vrot.lane.b32.xlu0 %v1983_v41, %s2307_s21  ;;  %2022 = vperm.xlu1 %2251, %v2019_v47   ;;  %v1742_v47 = vmul.f32 %v2910_v43, %v2870_v62  ;;  %v3025_v41 = vsel %vm791_vm4, %v1577_v12, %v2989_v63 }
 0x2bf   : > { %1317 = vperm.xlu0 %2250, %v2681_v30   ;;  %1346 = vrot.lane.b32.xlu1 %v1342_v37, %s2305_s19  ;;  %v1399_v30 = vmul.f32 %v1397_v6, %v2854_v56 }
 0x2c3   : > { %1440 = vrot.lane.b32.xlu0 %v2499_v54, %s2309_s23  ;;  %1348 = vrot.lane.b32.xlu1 %v1343_v61, %s2305_s19  ;;  %v2985_v54 = vpop.permute.xlu1 %1566  ;;  %s3162_s19 = smov 127  }
 0x2c7   : > { %1374 = vrot.lane.b32.xlu0 %v1370_v36, %s2306_s20  ;;  %1376 = vrot.lane.b32.xlu1 %v1371_v40, %s2306_s20  ;;  %v2987_v1 = vpop.permute.xlu1 %1682  ;;  %s3163_s20 = smov 125  }
 0x2cb   : > { %1403 = vrot.lane.b32.xlu0 %v1399_v30, %s2304_s16  ;;  %v2991_v18 = vpop.permute.xlu1 %1816  ;;  %s3161_s16 = smov 126  }
 0x2cf   : > { %1429 = vrot.lane.b32.xlu0 %v1425_v59, %s2307_s21  ;;  %v2995_v11 = vpop.permute.xlu1 %1936 }
 0x2d3   : > { %v2999_v9 = vpop.permute.xlu1 %1708 }
 0x2d7   : > { %v3001_v56 = vpop.permute.xlu1 %1851 }
 0x2fd   : > { %v1483_v45 = vpop.permute.xlu0 %1482  ;;  %v1485_v23 = vpop.permute.xlu1 %1484 }
 0x2fe   : > { %v1486_v53 = vrot.slane %v1483_v45, 4  ;;  %v1487_v32 = vrot.slane %v1485_v23, 4  ;;  %v1493_v20 = vadd.f32 %v1485_v23, %v2889_v15 }
 0x300   : > { %v1488_v31 = vsel %vm1352_vm13, %v1486_v53, %v1487_v32 }
 0x301   : > { %v1510_v19 = vpop.permute.xlu0 %1509  ;;  %v1512_v49 = vpop.permute.xlu1 %1511  ;;  %v1489_v8 = vsel %vm588_vm0, %v1483_v45, %v1488_v31 }
 0x302   : > { %v1513_v44 = vrot.slane %v1510_v19, 4  ;;  %v1514_v0 = vrot.slane %v1512_v49, 4  ;;  %v1492_v61 = vadd.f32 %v1489_v8, %v1463_v27  ;;  %v1520_v59 = vadd.f32 %v1512_v49, %v1493_v20 }
 0x304   : > { %v1515_v26 = vsel %vm1352_vm13, %v1513_v44, %v1514_v0 }
 0x305   : > { %v1630_v48 = vpop.permute.xlu0 %1629  ;;  %v1632_v60 = vpop.permute.xlu1 %1631  ;;  %v1516_v22 = vsel %vm608_vm1, %v1510_v19, %v1515_v26 }
 0x306   : > { %v1633_v39 = vrot.slane %v1630_v48, 4  ;;  %v1634_v42 = vrot.slane %v1632_v60, 4  ;;  %v1640_v45 = vadd.f32 %v1632_v60, %v2902_v38  ;;  %v1519_v53 = vadd.f32 %v1516_v22, %v1492_v61 }
 0x308   : > { %v1635_v6 = vsel %vm1352_vm13, %v1633_v39, %v1634_v42 }
 0x309   : > { %v1762_v35 = vpop.permute.xlu0 %1761  ;;  %v1764_v17 = vpop.permute.xlu1 %1763  ;;  %v1636_v10 = vsel %vm588_vm0, %v1630_v48, %v1635_v6 }
 0x30a   : > { %v1765_v46 = vrot.slane %v1762_v35, 4  ;;  %v1766_v16 = vrot.slane %v1764_v17, 4  ;;  %v1772_v33 = vadd.f32 %v1764_v17, %v2915_v51 }
 0x30c   : > { %v1767_v52 = vsel %vm1352_vm13, %v1765_v46, %v1766_v16 }
 0x30d   : > { %v1539_v21 = vpop.permute.xlu0 %1538  ;;  %v3005_v5 = vpop.permute.xlu1 %1905  ;;  %v1768_v40 = vsel %vm588_vm0, %v1762_v35, %v1767_v52  ;;  %v1639_v35 = vadd.f32 %v1636_v10, %v1610_v24 }
 0x30e   : > { %v1542_v50 = vrot.slane %v1539_v21, 4  ;;  %v1909_v44 = vrot.slane %v3005_v5, 4  ;;  %v1771_v0 = vadd.f32 %v1768_v40, %v1742_v47 }
 0x310   : > { %v1543_v36 = vsel %vm629_vm2, %v1542_v50, %v1539_v21  ;;  %v1544_v15 = vsel %vm629_vm2, %v1542_v50, %v2983_v58 }
 0x311   : > { %v3007_v3 = vpop.permute.xlu0 %1907  ;;  %v1656_v55 = vpop.permute.xlu1 %1655  ;;  %v1547_v21 = vadd.f32 %v1543_v36, %v1519_v53  ;;  %v1548_v58 = vadd.f32 %v1544_v15, %v1520_v59  ;;  %v1853_v36 = vrot.slane %v3001_v56, 4 }
 0x312   : > { %v1657_v37 = vrot.slane %v1656_v55, 4  ;;  %v1910_v19 = vrot.slane %v3007_v3, 4  ;;  %v1916_v20 = vadd.f32 %v3007_v3, %v2923_v28 }
 0x314   : > { %v1658_v23 = vsel %vm608_vm1, %v1657_v37, %v1656_v55  ;;  %v1911_v17 = vsel %vm1352_vm13, %v1909_v44, %v1910_v19  ;;  %v1662_v42 = vadd.f32 %v1657_v37, %v1640_v45 }
 0x315   : > { %v1565_v57 = vpop.permute.xlu0 %1564  ;;  %v1681_v34 = vpop.permute.xlu1 %1680  ;;  %v1661_v55 = vadd.f32 %v1658_v23, %v1639_v35 }
 0x316   : > { %v1684_v43 = vrot.slane %v1681_v34, 4  ;;  %v1568_v48 = vrot.slane %v1565_v57, 4 }
 0x318   : > { %v1685_v38 = vsel %vm629_vm2, %v1684_v43, %v1681_v34  ;;  %v1686_v60 = vsel %vm629_vm2, %v1684_v43, %v2987_v1  ;;  %v1569_v46 = vsel %vm649_vm3, %v1568_v48, %v1565_v57  ;;  %v1570_v16 = vsel %vm649_vm3, %v1568_v48, %v2985_v54 }
 0x319   : > { %v1789_v2 = vpop.permute.xlu0 %1788  ;;  %v1815_v49 = vpop.permute.xlu1 %1814  ;;  %v1689_v8 = vadd.f32 %v1685_v38, %v1661_v55  ;;  %v1690_v1 = vadd.f32 %v1686_v60, %v1662_v42  ;;  %v1574_v57 = vadd.f32 %v1570_v16, %v1548_v58  ;;  %v2264_v58 = vld [vmem:[%s2511_s15] sm:$0xff] }
 0x31a   : > { %v1792_v30 = vrot.slane %v1789_v2, 4  ;;  %v1818_v26 = vrot.slane %v1815_v49, 4 }
 0x31c   : > { %v1793_v39 = vsel %vm608_vm1, %v1792_v30, %v1789_v2  ;;  %v1794_v51 = vsel %vm608_vm1, %v1792_v30, %v2993_v7  ;;  %v1912_v7 = vsel %vm588_vm0, %v3005_v5, %v1911_v17  ;;  %v1573_v2 = vadd.f32 %v1569_v46, %v1547_v21  ;;  %v2265_v17 = vld [vmem:[%s2511_s15 + $0x8] sm:$0xff] }
 0x31d   : > { %v1935_v32 = vpop.permute.xlu0 %1934  ;;  %v1797_v50 = vadd.f32 %v1793_v39, %v1771_v0  ;;  %v1798_v27 = vadd.f32 %v1794_v51, %v1772_v33  ;;  %v1987_v47 = vpop.permute.xlu1 %1986  ;;  %v1819_v61 = vsel %vm629_vm2, %v1818_v26, %v1815_v49  ;;  %v1820_v5 = vsel %vm629_vm2, %v1818_v26, %v2991_v18 }
 0x31e   : > { %v1938_v24 = vrot.slane %v1935_v32, 4  ;;  %v1581_v59 = vmul.f32 %v3025_v41, %v1573_v2  ;;  %v1990_v15 = vrot.slane %v1987_v47, 4  ;;  %v2043_v55 = vcombine.high %v2264_v58, %v2265_v17 }
 0x31f   : > { %v1823_v43 = vadd.f32 %v1819_v61, %v1797_v50  ;;  %v1824_v40 = vadd.f32 %v1820_v5, %v1798_v27 }
 0x320   : > { %v1939_v30 = vsel %vm608_vm1, %v1938_v24, %v1935_v32  ;;  %v1940_v28 = vsel %vm608_vm1, %v1938_v24, %v2995_v11  ;;  %v1991_v49 = vsel %vm649_vm3, %v1990_v15, %v1987_v47 }
 0x321   : > { %v1707_v31 = vpop.permute.xlu0 %1706  ;;  %v1998_v33 = vpop.permute.xlu1 %1997  ;;  %v1944_v11 = vadd.f32 %v1940_v28, %v1916_v20 }
 0x322   : > { %v1710_v6 = vrot.slane %v1707_v31, 4  ;;  %v1999_v48 = vrot.slane %v1998_v33, 4 }
 0x324   : > { %v1711_v52 = vsel %vm649_vm3, %v1710_v6, %v1707_v31  ;;  %v1712_v34 = vsel %vm649_vm3, %v1710_v6, %v2999_v9  ;;  %v1915_v9 = vadd.f32 %v1912_v7, %v1886_v4  ;;  %v1582_v4 = vmul.f32 %v1577_v12, %v1574_v57 }
 0x325   : > { %v1715_v22 = vadd.f32 %v1711_v52, %v1689_v8  ;;  %v1716_v54 = vadd.f32 %v1712_v34, %v1690_v1  ;;  %v1841_v37 = vpop.permute.xlu0 %1840  ;;  %v1406_v42 = vpop.permute.xlu1 %1405 }
 0x326   : > { %v1844_v10 = vrot.slane %v1841_v37, 4  ;;  %v1943_v32 = vadd.f32 %v1939_v30, %v1915_v9 }
 0x327   : > { %1721 = vrot.lane.b32.xlu0 %v1716_v54, %s3161_s16  ;;  %1719 = vrot.lane.b32.xlu1 %v1715_v22, %s3161_s16 }
 0x328   : > { %v1845_v3 = vsel %vm649_vm3, %v1844_v10, %v1841_v37  ;;  %v1846_v18 = vsel %vm649_vm3, %v1844_v10, %v2997_v13  ;;  %v1854_v13 = vsel %vm1013_vm5, %v1853_v36, %v3001_v56  ;;  %v2000_v56 = vsel %vm1137_vm6, %v1999_v48, %v1998_v33 }
 0x329   : > { %v1849_v45 = vadd.f32 %v1845_v3, %v1823_v43  ;;  %v1850_v53 = vadd.f32 %v1846_v18, %v1824_v40  ;;  %v1961_v19 = vpop.permute.xlu0 %1960  ;;  %v1432_v31 = vpop.permute.xlu1 %1431 }
 0x32a   : > { %v1964_v23 = vrot.slane %v1961_v19, 4 }
 0x32b   : > { %1587 = vrot.lane.b32.xlu0 %v1582_v4, %s3162_s19  ;;  %1585 = vrot.lane.b32.xlu1 %v1581_v59, %s3162_s19  ;;  %v1857_v63 = vmul.f32 %v1854_v13, %v1849_v45  ;;  %v1858_v0 = vmul.f32 %v1853_v36, %v1850_v53 }
 0x32c   : > { %v1965_v41 = vsel %vm629_vm2, %v1964_v23, %v1961_v19  ;;  %v1966_v21 = vsel %vm629_vm2, %v1964_v23, %v3003_v14 }
 0x32d   : > { %v1969_v12 = vadd.f32 %v1965_v41, %v1943_v32  ;;  %v1989_v44 = vpop.permute.xlu0 %1988  ;;  %v1970_v35 = vadd.f32 %v1966_v21, %v1944_v11 }
 0x32e   : > { %v1992_v38 = vsel %vm649_vm3, %v1990_v15, %v1989_v44 }
 0x32f   : > { %v1995_v60 = vadd.f32 %v1991_v49, %v1969_v12  ;;  %v1996_v39 = vadd.f32 %v1992_v38, %v1970_v35  ;;  %1863 = vrot.lane.b32.xlu1 %v1858_v0, %s3163_s20  ;;  %1861 = vrot.lane.b32.xlu0 %v1857_v63, %s3163_s20 }
 0x331   : > { %v2003_v14 = vmul.f32 %v2000_v56, %v1995_v60  ;;  %v2004_v51 = vmul.f32 %v1999_v48, %v1996_v39 }
 0x333   : > { %2009 = vrot.lane.b32.xlu1 %v2004_v51, %s2313_s25  ;;  %2007 = vrot.lane.b32.xlu0 %v2003_v14, %s2313_s25 }
 0x337   : > { %2044 = vrot.lane.b32.xlu0 %v2043_v55, %s2309_s23 }
 0x33a   : > { %v3090_v16 = vpop.permute.xlu1 %2022 }
 0x33e   : > { %v1318_v46 = vpop.permute.xlu0 %1317  ;;  %v1347_v6 = vpop.permute.xlu1 %1346 }
 0x33f   : > { %v1325_v7 = vrot.slane %v1318_v46, %v2775_v25  ;;  %v1350_v52 = vrot.slane %v1347_v6, 4 }
 0x341   : > { %v1328_v57 = vmul.f32 %v1325_v7, %v2968_v29  ;;  %v1327_v5 = vmul.f32 %v1325_v7, %v2870_v62 }
 0x342   : > { %v1441_v26 = vpop.permute.xlu0 %1440  ;;  %v1349_v1 = vpop.permute.xlu1 %1348 }
 0x343   : > { %v1351_v24 = vrot.slane %v1349_v1, 4  ;;  %v1358_v10 = vadd.f32 %v1349_v1, %v1328_v57  ;;  %v1442_v18 = vrot.slane %v1441_v26, 4 }
 0x345   : > { %v1353_v47 = vsel %vm1352_vm13, %v1350_v52, %v1351_v24  ;;  %v1443_v32 = vsel %vm674_vm7, %v1442_v18, %v1441_v26 }
 0x346   : > { %v1375_v8 = vpop.permute.xlu0 %1374  ;;  %v1377_v27 = vpop.permute.xlu1 %1376  ;;  %v1354_v20 = vsel %vm588_vm0, %v1347_v6, %v1353_v47 }
 0x347   : > { %v1378_v34 = vrot.slane %v1375_v8, 4  ;;  %v1379_v2 = vrot.slane %v1377_v27, 4  ;;  %v1385_v40 = vadd.f32 %v1377_v27, %v1358_v10  ;;  %v1357_v9 = vadd.f32 %v1354_v20, %v1327_v5 }
 0x349   : > { %v1380_v37 = vsel %vm1352_vm13, %v1378_v34, %v1379_v2 }
 0x34a   : > { %v1404_v50 = vpop.permute.xlu0 %1403  ;;  %v1381_v36 = vsel %vm608_vm1, %v1375_v8, %v1380_v37  ;;  %v2030_v8 = vrot.slane %v3090_v16, %v2775_v25 }
 0x34b   : > { %v1407_v54 = vrot.slane %v1404_v50, 4  ;;  %v1384_v30 = vadd.f32 %v1381_v36, %v1357_v9 }
 0x34d   : > { %v1409_v43 = vsel %vm629_vm2, %v1407_v54, %v1406_v42  ;;  %v1408_v3 = vsel %vm629_vm2, %v1407_v54, %v1404_v50 }
 0x34e   : > { %v1430_v22 = vpop.permute.xlu0 %1429  ;;  %v1413_v28 = vadd.f32 %v1409_v43, %v1385_v40  ;;  %v1412_v62 = vadd.f32 %v1408_v3, %v1384_v30 }
 0x34f   : > { %v1433_v61 = vrot.slane %v1430_v22, 4 }
 0x351   : > { %v1435_v29 = vsel %vm649_vm3, %v1433_v61, %v1432_v31  ;;  %v1434_v45 = vsel %vm649_vm3, %v1433_v61, %v1430_v22 }
 0x352   : > { %v1439_v59 = vadd.f32 %v1435_v29, %v1413_v28  ;;  %v1438_v4 = vadd.f32 %v1434_v45, %v1412_v62 }
 0x354   : > { %v1447_v23 = vmul.f32 %v1442_v18, %v1439_v59  ;;  %v1446_v12 = vmul.f32 %v1443_v32, %v1438_v4 }
 0x399   : > { %v1722_v53 = vpop.permute.xlu0 %1721  ;;  %v1720_v19 = vpop.permute.xlu1 %1719 }
 0x39a   : > { %v1724_v33 = vrot.slane %v1722_v53, 4  ;;  %v1723_v15 = vrot.slane %v1720_v19, 4 }
 0x39c   : > { %v1725_v63 = vsel %vm1352_vm13, %v1723_v15, %v1724_v33 }
 0x39d   : > { %v1588_v11 = vpop.permute.xlu0 %1587  ;;  %v1586_v13 = vpop.permute.xlu1 %1585  ;;  %v1726_v14 = vsel %vm899_vm9, %v1720_v19, %v1725_v63 }
 0x39e   : > { %v1590_v41 = vrot.slane %v1588_v11, 4  ;;  %v1596_v48 = vadd.f32 %v1588_v11, %v1447_v23  ;;  %v1589_v21 = vrot.slane %v1586_v13, 4 }
 0x3a0   : > { %v1591_v44 = vsel %vm1352_vm13, %v1589_v21, %v1590_v41  ;;  %v1730_v35 = vadd.f32 %v1722_v53, %v1596_v48 }
 0x3a1   : > { %v1592_v0 = vsel %vm799_vm8, %v1586_v13, %v1591_v44  ;;  %v1862_v49 = vpop.permute.xlu0 %1861  ;;  %v1864_v38 = vpop.permute.xlu1 %1863 }
 0x3a2   : > { %v1595_v60 = vadd.f32 %v1592_v0, %v1446_v12  ;;  %v1865_v39 = vrot.slane %v1862_v49, 4  ;;  %v1866_v56 = vrot.slane %v1864_v38, 4  ;;  %v1872_v17 = vadd.f32 %v1864_v38, %v1730_v35 }
 0x3a4   : > { %v1729_v51 = vadd.f32 %v1726_v14, %v1595_v60  ;;  %v1867_v58 = vsel %vm1352_vm13, %v1865_v39, %v1866_v56 }
 0x3a5   : > { %v1868_v55 = vsel %vm1021_vm10, %v1862_v49, %v1867_v58  ;;  %v2008_v42 = vpop.permute.xlu0 %2007  ;;  %v2010_v31 = vpop.permute.xlu1 %2009 }
 0x3a6   : > { %v2011_v46 = vrot.slane %v2008_v42, 4  ;;  %v2012_v26 = vrot.slane %v2010_v31, 4  ;;  %v2018_v6 = vadd.f32 %v2010_v31, %v1872_v17  ;;  %v1871_v50 = vadd.f32 %v1868_v55, %v1729_v51 }
 0x3a8   : > { %v2013_v1 = vsel %vm1352_vm13, %v2011_v46, %v2012_v26  ;;  %v2033_v24 = vadd.f32 %v2030_v8, %v2018_v6 }
 0x3a9   : > { %v2045_v27 = vpop.permute.xlu0 %2044  ;;  %v2014_v7 = vsel %vm1145_vm11, %v2008_v42, %v2013_v1 }
 0x3aa   : > { %v2017_v52 = vadd.f32 %v2014_v7, %v1871_v50  ;;  %v2046_v34 = vrot.slane %v2045_v27, 4 }
 0x3ac   : > { %v2032_v2 = vadd.f32 %v2030_v8, %v2017_v52  ;;  %v2047_v57 = vsel %vm674_vm7, %v2046_v34, %v2045_v27  ;;  %v2051_v47 = vadd.f32 %v2046_v34, %v2033_v24 }
 0x3ae   : > { %v2050_v22 = vadd.f32 %v2047_v57, %v2032_v2  ;;  %2056 = vrot.lane.b32.xlu0 %v2051_v47, %s2314_s24 }
 0x3b0   : > { %2054 = vrot.lane.b32.xlu1 %v2050_v22, %s2314_s24 }
 0x420   : > { %v2057_v25 = vpop.permute.xlu0 %2056 }
 0x421   : > { %v2059_v54 = vrot.slane %v2057_v25, 4 }
 0x422   : > { %v2055_v16 = vpop.permute.xlu1 %2054 }
 0x423   : > { %v2058_v37 = vrot.slane %v2055_v16, 4 }
 0x425   : > { %v2060_v20 = vsel %vm1352_vm13, %v2058_v37, %v2059_v54 }
 0x426   : > { %v2061_v61 = vsel %vm1290_vm12, %v2055_v16, %v2060_v20 }
 0x427   : > { %2133 = vst [vmem:[%s2865_s27 + $0x8] sm:$0xff] %v2061_v61 }
 0x428 PF: > { %s21_s17 = sadd.s32 1, %s2272_s17  }
 0x429   : > { %p18_p4 = scmp.ge.s32.totalorder %s21_s17, 4  }
 0x42b   :  { %20 = sbr.rel (!%p18_p4) target bundleno = 1 (0x1), region = 95 }

</bundles_post_ra>
